<compile_context>
chip_gen: v6e
topology: v6e:2x2x1
jax: 0.10.0
libtpu: 0.0.40
codegen_flags: <defaults>
</compile_context>

<pallas_src>
import jax
import jax.numpy as jnp
from jax.experimental import pallas as pl
from jax.experimental.pallas import tpu as pltpu

HIDDEN = 32            # model_config['hidden_dim']
NUM_FA_LAYERS = 3
NUM_GCN_LAYERS = 3
FA_EPS = 0.1           # FAConv default eps
NEG_BIG = -3.0e38      # python float -> jaxpr literal
LANE = 128


# ---------------------------------------------------------------------------
# VMEM-aware planning (generation aware via get_tpu_info, safe fallback)
# ---------------------------------------------------------------------------
def _vmem_capacity_bytes():
    try:
        info = pltpu.get_tpu_info()
        cap = getattr(info, "vmem_capacity_bytes", None)
        if cap:
            return int(cap)
    except Exception:
        pass
    return 64 * 1024 * 1024          # conservative (v7x per-core VMEM)


_VMEM_CAP = _vmem_capacity_bytes()
_VMEM_BUDGET = int(_VMEM_CAP * 0.55)   # planning budget (residency / tile choice)
_VMEM_LIMIT = int(_VMEM_CAP * 0.85)    # scoped-vmem limit handed to Mosaic


def _round_up(x, m):
    return ((x + m - 1) // m) * m


def _plan_tiles(np_, h, n_adj):
    """Pick (row_tile, adjacency_resident) from the VMEM budget.

    np_ is already padded to a multiple of 128, so all candidates divide it.
    Double-buffering is counted at 2x for every streamed/resident block.
    """
    fixed = (2 * np_ * h * 4      # two f32 ping-pong state scratch buffers
             + np_ * h * 2        # bf16 state cache scratch
             + 2 * np_ * h * 4    # resident f32 node-feature input block (2 bufs)
             + np_ * 4            # att_l projection scratch
             + 512 * 1024)        # weights / pool tiles / headroom
    cands = [c for c in (512, 256, 128) if c <= np_ and np_ % c == 0] or [128]
    resident = (fixed + n_adj * 2 * np_ * np_ * 2
                + cands[-1] * np_ * 2) <= _VMEM_BUDGET
    for tm in cands:
        adj_bytes = n_adj * 2 * (np_ if resident else tm) * np_ * 2
        if fixed + adj_bytes + tm * np_ * 2 <= _VMEM_BUDGET:
            return tm, resident
    return cands[-1], False


# ---------------------------------------------------------------------------
# Kernel 1: 3x FAConv -> global (sum) pool        (mut / cnv branch)
# grid = (layer, row_tile); bf16 adjacency resident or streamed in row tiles.
# ---------------------------------------------------------------------------
def _make_fa_kernel(tm, resident):
    def kernel(x0_ref, a_ref, att_ref, pool_ref, out_ref,
               xa_ref, xb_ref, x16_ref, al_ref):
        l = pl.program_id(0)
        t = pl.program_id(1)
        row0 = pl.multiple_of(t * tm, tm)

        @pl.when(jnp.logical_and(l == 0, t == 0))
        def _init():
            out_ref[...] = jnp.zeros_like(out_ref)

        def a_rows():
            if resident:
                return a_ref[pl.ds(row0, tm), :]          # (TM, N) bf16
            return a_ref[...]

        def _fa_layer(k, src_ref, dst_ref):
            @pl.when(l == k)
            def _():
                att = att_ref[k]                          # (2, H): [att_l; att_r]

                # Per-layer invariants hoisted to the first tile:
                #   bf16 state cache for the MXU, att_l projection over all nodes.
                @pl.when(t == 0)
                def _():
                    x_full = src_ref[...]                                    # (N, H) f32
                    x16_ref[...] = x_full.astype(jnp.bfloat16)
                    al_ref[...] = jnp.sum(x_full * att[0:1, :], axis=-1,
                                          keepdims=True).T                   # (1, N)

                x_rows = src_ref[pl.ds(row0, tm), :]                         # (TM, H) f32
                ar = jnp.sum(x_rows * att[1:2, :], axis=-1, keepdims=True)   # (TM, 1)
                # msg[i,j] = a[i,j] * tanh(att_r(x_i) + att_l(x_j)), bf16 end-to-end
                gate = jnp.tanh(ar.astype(jnp.bfloat16)
                                + al_ref[...].astype(jnp.bfloat16))          # (TM, N) bf16
                msg = a_rows() * gate                                        # (TM, N) bf16
                x_new = (jnp.dot(msg, x16_ref[...],
                                 preferred_element_type=jnp.float32)
                         + FA_EPS * x0_ref[pl.ds(row0, tm), :])              # (TM, H) f32
                dst_ref[pl.ds(row0, tm), :] = x_new
                if k == NUM_FA_LAYERS - 1:
                    # sum-pool this row tile: out += onehot[:, rows] @ x3[rows]
                    out_ref[...] += jnp.dot(pool_ref[...],
                                            x_new.astype(jnp.bfloat16),
                                            preferred_element_type=jnp.float32)

        bufs = (xb_ref, xa_ref)
        for k in range(NUM_FA_LAYERS):
            src = x0_ref if k == 0 else bufs[(k - 1) % 2]
            dst = bufs[k % 2]
            _fa_layer(k, src, dst)

    return kernel


def fa_gnn_forward(x0, adj, pool_onehot, att_lr):
    """x0: (Np, H) f32, adj: (Np, Np) bf16, pool_onehot: (B, Np) bf16."""
    np_, h = int(x0.shape[0]), int(x0.shape[1])
    b = int(pool_onehot.shape[0])
    tm, resident = _plan_tiles(np_, h, n_adj=1)
    nt = np_ // tm
    if resident:
        a_spec = pl.BlockSpec((np_, np_), lambda l, t: (0, 0))
    else:
        a_spec = pl.BlockSpec((tm, np_), lambda l, t: (t, 0))
    return pl.pallas_call(
        _make_fa_kernel(tm, resident),
        out_shape=jax.ShapeDtypeStruct((b, h), jnp.float32),
        grid=(NUM_FA_LAYERS, nt),
        in_specs=[
            pl.BlockSpec((np_, h), lambda l, t: (0, 0)),                    # x0 (resident)
            a_spec,                                                         # adjacency bf16
            pl.BlockSpec((NUM_FA_LAYERS, 2, h), lambda l, t: (0, 0, 0)),    # att_l/att_r
            pl.BlockSpec((b, tm), lambda l, t: (0, t)),                     # pool one-hot cols
        ],
        out_specs=pl.BlockSpec((b, h), lambda l, t: (0, 0)),
        scratch_shapes=[pltpu.VMEM((np_, h), jnp.float32),
                        pltpu.VMEM((np_, h), jnp.float32),
                        pltpu.VMEM((np_, h), jnp.bfloat16),
                        pltpu.VMEM((1, np_), jnp.float32)],
        compiler_params=pltpu.CompilerParams(
            dimension_semantics=("arbitrary", "arbitrary"),
            vmem_limit_bytes=_VMEM_LIMIT),
    )(x0, adj, att_lr, pool_onehot)


# ---------------------------------------------------------------------------
# Kernel 2: Sim_GNN: Linear(1,H) -> 3x gated dual-GCN -> global_max_pool (ge)
# grid = (layer, row_tile); both bf16 adjacencies resident or streamed.
# GCN reassociated as (A @ h) @ W; gate via VPU lane-reduce.
# ---------------------------------------------------------------------------
def _make_sim_kernel(tm, resident):
    def kernel(x_ref, a_ref, asim_ref, w1_ref, b1_ref, wg_ref, bg_ref,
               ws_ref, bs_ref, ww_ref, bw_ref, mask_ref, out_ref,
               ha_ref, hb_ref, h16_ref):
        l = pl.program_id(0)
        t = pl.program_id(1)
        row0 = pl.multiple_of(t * tm, tm)

        @pl.when(jnp.logical_and(l == 0, t == 0))
        def _init():
            # lin1: (N,1)*(1,H)+(1,H) outer product on the VPU (no K=1 matmul)
            ha_ref[...] = x_ref[...] * w1_ref[...] + b1_ref[...]
            out_ref[...] = jnp.full_like(out_ref, NEG_BIG)

        def rows(ref):
            if resident:
                return ref[pl.ds(row0, tm), :]            # (TM, N) bf16
            return ref[...]

        def _gcn_layer(k, src_ref, dst_ref):
            @pl.when(l == k)
            def _():
                # Per-layer bf16 state cache, hoisted to the first tile.
                @pl.when(t == 0)
                def _():
                    h16_ref[...] = src_ref[...].astype(jnp.bfloat16)

                h16 = h16_ref[...]                                           # (N, H) bf16
                agg = jnp.dot(rows(a_ref), h16,
                              preferred_element_type=jnp.float32)            # (TM, H)
                aggs = jnp.dot(rows(asim_ref), h16,
                               preferred_element_type=jnp.float32)           # (TM, H)
                xg = jnp.maximum(jnp.dot(agg, wg_ref[k],
                                         preferred_element_type=jnp.float32)
                                 + bg_ref[k], 0.0)
                xs = jnp.maximum(jnp.dot(aggs, ws_ref[k],
                                         preferred_element_type=jnp.float32)
                                 + bs_ref[k], 0.0)
                h_rows = src_ref[pl.ds(row0, tm), :]                         # (TM, H) f32
                s = jax.nn.sigmoid(jnp.sum(h_rows * ww_ref[k], axis=-1,
                                           keepdims=True) + bw_ref[k])       # (TM, 1)
                h_new = s * xg + (1.0 - s) * xs
                dst_ref[pl.ds(row0, tm), :] = h_new
                if k == NUM_GCN_LAYERS - 1:
                    # global_max_pool over this row tile (B is small here; for
                    # large B chunk TM or segment-max the node state in XLA).
                    m = mask_ref[...]                                        # (B, TM)
                    cand = jnp.where(m[:, :, None] > 0.5,
                                     h_new[None, :, :], NEG_BIG)
                    out_ref[...] = jnp.maximum(out_ref[...],
                                               jnp.max(cand, axis=1))

        bufs = (hb_ref, ha_ref)
        for k in range(NUM_GCN_LAYERS):
            src = ha_ref if k == 0 else bufs[(k - 1) % 2]
            dst = bufs[k % 2]
            _gcn_layer(k, src, dst)

    return kernel


def sim_gnn_forward(x, adj, adj_sim, mask, p):
    """x: (Np, 1) f32, adj/adj_sim: (Np, Np) bf16, mask: (B, Np) f32."""
    np_ = int(x.shape[0])
    b = int(mask.shape[0])
    h = HIDDEN
    tm, resident = _plan_tiles(np_, h, n_adj=2)
    nt = np_ // tm
    if resident:
        a_spec = pl.BlockSpec((np_, np_), lambda l, t: (0, 0))
    else:
        a_spec = pl.BlockSpec((tm, np_), lambda l, t: (t, 0))
    return pl.pallas_call(
        _make_sim_kernel(tm, resident),
        out_shape=jax.ShapeDtypeStruct((b, h), jnp.float32),
        grid=(NUM_GCN_LAYERS, nt),
        in_specs=[
            pl.BlockSpec((np_, 1), lambda l, t: (0, 0)),                    # x
            a_spec,                                                         # A (bf16)
            a_spec,                                                         # A_sim (bf16)
            pl.BlockSpec((1, h), lambda l, t: (0, 0)),                      # w1
            pl.BlockSpec((1, h), lambda l, t: (0, 0)),                      # b1
            pl.BlockSpec((NUM_GCN_LAYERS, h, h), lambda l, t: (0, 0, 0)),   # wg
            pl.BlockSpec((NUM_GCN_LAYERS, 1, h), lambda l, t: (0, 0, 0)),   # bg
            pl.BlockSpec((NUM_GCN_LAYERS, h, h), lambda l, t: (0, 0, 0)),   # ws
            pl.BlockSpec((NUM_GCN_LAYERS, 1, h), lambda l, t: (0, 0, 0)),   # bs
            pl.BlockSpec((NUM_GCN_LAYERS, 1, h), lambda l, t: (0, 0, 0)),   # ww (gate row)
            pl.BlockSpec((NUM_GCN_LAYERS, 1, 1), lambda l, t: (0, 0, 0)),   # bw (gate bias)
            pl.BlockSpec((b, tm), lambda l, t: (0, t)),                     # max-pool mask
        ],
        out_specs=pl.BlockSpec((b, h), lambda l, t: (0, 0)),
        scratch_shapes=[pltpu.VMEM((np_, h), jnp.float32),
                        pltpu.VMEM((np_, h), jnp.float32),
                        pltpu.VMEM((np_, h), jnp.bfloat16)],
        compiler_params=pltpu.CompilerParams(
            dimension_semantics=("arbitrary", "arbitrary"),
            vmem_limit_bytes=_VMEM_LIMIT),
    )(x, adj, adj_sim,
      p['ge_w1'], p['ge_b1'], p['ge_wg'], p['ge_bg'], p['ge_ws'], p['ge_bs'],
      p['ge_ww'], p['ge_bw'], mask)


# ---------------------------------------------------------------------------
# JAX glue: dense gcn_norm adjacency (bf16, padded), pooling matrices, params
# (For static graphs this glue should be computed once and reused across calls.)
# ---------------------------------------------------------------------------
def gcn_norm_dense(edge_index, num_nodes, num_nodes_padded):
    """Dense D^-1/2 (A + I) D^-1/2 padded to (Np, Np), returned in bf16.
    Edge multiplicity kept, exactly one unit self-loop per node."""
    src, dst = edge_index[0], edge_index[1]
    a = jnp.zeros((num_nodes, num_nodes), jnp.float32).at[dst, src].add(1.0)
    eye = jnp.eye(num_nodes, dtype=jnp.float32)
    a = a * (1.0 - eye) + eye
    deg = a.sum(axis=1)
    dinv = jax.lax.rsqrt(deg)
    a = a * dinv[:, None] * dinv[None, :]
    pad = num_nodes_padded - num_nodes
    return jnp.pad(a, ((0, pad), (0, pad))).astype(jnp.bfloat16)


def pool_sum_matrix(batch, num_graphs, n_padded):
    """Exact 0/1 one-hot (bf16) plus per-graph counts (mean applied in glue)."""
    onehot = jax.nn.one_hot(batch, num_graphs, dtype=jnp.float32).T   # (B, N)
    counts = jnp.maximum(onehot.sum(axis=1, keepdims=True), 1.0)      # (B, 1)
    onehot = jnp.pad(onehot, ((0, 0), (0, n_padded - onehot.shape[1])))
    return onehot.astype(jnp.bfloat16), counts


def max_pool_mask(batch, num_graphs, n_padded):
    onehot = jax.nn.one_hot(batch, num_graphs, dtype=jnp.float32).T   # (B, N)
    return jnp.pad(onehot, ((0, 0), (0, n_padded - onehot.shape[1])))


def init_params(key):
    ks = jax.random.split(key, 12)
    nrm = lambda k, shape: 0.1 * jax.random.normal(k, shape, jnp.float32)
    return {
        # Cell_encoder_mut: embedding + per-layer [att_l ; att_r] rows
        'mut_embed': nrm(ks[0], (2, HIDDEN)),
        'mut_att':   nrm(ks[1], (NUM_FA_LAYERS, 2, HIDDEN)),
        # Cell_encoder_cnv
        'cnv_embed': nrm(ks[2], (2, HIDDEN)),
        'cnv_att':   nrm(ks[3], (NUM_FA_LAYERS, 2, HIDDEN)),
        # Sim_GNN (weights stored so kernel does x @ W)
        'ge_w1': nrm(ks[4], (1, HIDDEN)),
        'ge_b1': nrm(ks[5], (1, HIDDEN)),
        'ge_wg': nrm(ks[6], (NUM_GCN_LAYERS, HIDDEN, HIDDEN)),
        'ge_bg': nrm(ks[7], (NUM_GCN_LAYERS, 1, HIDDEN)),
        'ge_ws': nrm(ks[8], (NUM_GCN_LAYERS, HIDDEN, HIDDEN)),
        'ge_bs': nrm(ks[9], (NUM_GCN_LAYERS, 1, HIDDEN)),
        'ge_ww': nrm(ks[10], (NUM_GCN_LAYERS, 1, HIDDEN)),
        'ge_bw': nrm(ks[11], (NUM_GCN_LAYERS, 1, 1)),
    }


def cell_multi_omics_encoder(params, ge, ge_sim, cnv, mut, num_graphs):
    def fa_branch(data, embed, att):
        n = int(data['x'].shape[0])
        np_ = _round_up(n, LANE)
        x_int = data['x'].reshape(-1).astype(jnp.int32)
        # exact Embedding(2, H) gather (indices must be in {0, 1}), zero-padded
        x0 = jnp.take(embed, x_int, axis=0).astype(jnp.float32)
        x0 = jnp.pad(x0, ((0, np_ - n), (0, 0)))
        adj = gcn_norm_dense(data['edge_index'], n, np_)
        pool, counts = pool_sum_matrix(data['batch'], num_graphs, np_)
        summed = fa_gnn_forward(x0, adj, pool, att)
        return summed / counts                               # global_mean_pool

    mut_repr = fa_branch(mut, params['mut_embed'], params['mut_att'])
    cnv_repr = fa_branch(cnv, params['cnv_embed'], params['cnv_att'])

    n = int(ge['x'].shape[0])
    np_ = _round_up(n, LANE)
    x = ge['x'].astype(jnp.float32).reshape(n, 1)
    x = jnp.pad(x, ((0, np_ - n), (0, 0)))
    adj = gcn_norm_dense(ge['edge_index'], n, np_)
    adj_sim = gcn_norm_dense(ge_sim['edge_index'], n, np_)
    mask = max_pool_mask(ge['batch'], num_graphs, np_)
    ge_repr = sim_gnn_forward(x, adj, adj_sim, mask, params)

    return mut_repr, cnv_repr, ge_repr


# ---------------------------------------------------------------------------
# Example run
# ---------------------------------------------------------------------------
if __name__ == "__main__":
    key = jax.random.PRNGKey(0)
    k_param, k_mut, k_cnv, k_ge, k_edges = jax.random.split(key, 5)
    params = init_params(k_param)

    NUM_GRAPHS = 2
    NODES_PER_GRAPH = 16
    N = NUM_GRAPHS * NODES_PER_GRAPH

    def make_edges(k, nodes_per_graph, num_graphs, edges_per_graph=24):
        srcs, dsts = [], []
        ks = jax.random.split(k, num_graphs)
        for g in range(num_graphs):
            off = g * nodes_per_graph
            e = jax.random.randint(ks[g], (2, edges_per_graph), 0, nodes_per_graph)
            s, d = e[0] + off, e[1] + off
            srcs.append(jnp.concatenate([s, d]))   # undirected
            dsts.append(jnp.concatenate([d, s]))
        return jnp.stack([jnp.concatenate(srcs), jnp.concatenate(dsts)]).astype(jnp.int32)

    batch = jnp.repeat(jnp.arange(NUM_GRAPHS, dtype=jnp.int32), NODES_PER_GRAPH)
    k_e1, k_e2, k_e3, k_e4 = jax.random.split(k_edges, 4)

    mut = {'x': jax.random.randint(k_mut, (N,), 0, 2, dtype=jnp.int32),
           'edge_index': make_edges(k_e1, NODES_PER_GRAPH, NUM_GRAPHS),
           'batch': batch}
    cnv = {'x': jax.random.randint(k_cnv, (N,), 0, 2, dtype=jnp.int32),
           'edge_index': make_edges(k_e2, NODES_PER_GRAPH, NUM_GRAPHS),
           'batch': batch}
    ge = {'x': jax.random.normal(k_ge, (N, 1), jnp.float32),
          'edge_index': make_edges(k_e3, NODES_PER_GRAPH, NUM_GRAPHS),
          'batch': batch}
    ge_sim = {'edge_index': make_edges(k_e4, NODES_PER_GRAPH, NUM_GRAPHS)}

    mut_repr, cnv_repr, ge_repr = cell_multi_omics_encoder(
        params, ge, ge_sim, cnv, mut, NUM_GRAPHS)
    jax.block_until_ready((mut_repr, cnv_repr, ge_repr))

    assert mut_repr.shape == (NUM_GRAPHS, HIDDEN)
    assert cnv_repr.shape == (NUM_GRAPHS, HIDDEN)
    assert ge_repr.shape == (NUM_GRAPHS, HIDDEN)
    assert bool(jnp.all(jnp.isfinite(mut_repr)))
    assert bool(jnp.all(jnp.isfinite(cnv_repr)))
    assert bool(jnp.all(jnp.isfinite(ge_repr)))
    print("KERNEL_OK")
</pallas_src>

<mosaic_0001>
module attributes {stable_mosaic.version = 11 : i64} {
  func.func @kernel(%arg0: i32, %arg1: i32, %arg2: memref<128x32xf32, #tpu.memory_space<vmem>>, %arg3: memref<128x128xbf16, #tpu.memory_space<vmem>>, %arg4: memref<3x2x32xf32, #tpu.memory_space<vmem>>, %arg5: memref<2x128xbf16, #tpu.memory_space<vmem>>, %arg6: memref<2x32xf32, #tpu.memory_space<vmem>>, %arg7: memref<128x32xf32, #tpu.memory_space<vmem>>, %arg8: memref<128x32xf32, #tpu.memory_space<vmem>>, %arg9: memref<128x32xbf16, #tpu.memory_space<vmem>>, %arg10: memref<1x128xf32, #tpu.memory_space<vmem>>) attributes {dimension_semantics = [#tpu.dimension_semantics<arbitrary>, #tpu.dimension_semantics<arbitrary>], iteration_bounds = array<i64: 3, 1>, scalar_prefetch = 0 : i64, scratch_operands = 4 : i64, tpu.core_type = #tpu.core_type<tc>, window_params = [{pipeline_mode = #tpu.pipeline_mode<synchronous>, transform_indices = @transform_0, window_bounds = array<i64: 128, 32>}, {pipeline_mode = #tpu.pipeline_mode<synchronous>, transform_indices = @transform_1, window_bounds = array<i64: 128, 128>}, {pipeline_mode = #tpu.pipeline_mode<synchronous>, transform_indices = @transform_2, window_bounds = array<i64: 3, 2, 32>}, {transform_indices = @transform_3, window_bounds = array<i64: 2, 128>}, {pipeline_mode = #tpu.pipeline_mode<synchronous>, transform_indices = @transform_4, window_bounds = array<i64: 2, 32>}]} {
    %c128_i32 = arith.constant 128 : i32
    %0 = arith.muli %arg1, %c128_i32 : i32
    %1 = tpu.assume_multiple %0, 128 : i32
    %c0_i32 = arith.constant 0 : i32
    %2 = arith.cmpi eq, %arg0, %c0_i32 : i32
    %c0_i32_0 = arith.constant 0 : i32
    %3 = arith.cmpi eq, %arg1, %c0_i32_0 : i32
    %4 = arith.andi %2, %3 : i1
    %5 = arith.extui %4 : i1 to i32
    %c0_i32_1 = arith.constant 0 : i32
    %6 = arith.cmpi ne, %5, %c0_i32_1 : i32
    scf.if %6 {
      %cst = arith.constant 0.000000e+00 : f32
      %16 = vector.broadcast %cst : f32 to vector<2x32xf32>
      %c0 = arith.constant 0 : index
      %c0_6 = arith.constant 0 : index
      %17 = vector.load %arg6[%c0, %c0_6] : memref<2x32xf32, #tpu.memory_space<vmem>>, vector<2x32xf32>
      tpu.vector_store %arg6[%c0, %c0_6], %16 {strides = array<i32>} : memref<2x32xf32, #tpu.memory_space<vmem>>, vector<2x32xf32>,
    } else {
    }
    %c0_i32_2 = arith.constant 0 : i32
    %7 = arith.cmpi eq, %arg0, %c0_i32_2 : i32
    %8 = arith.extui %7 : i1 to i32
    %c0_i32_3 = arith.constant 0 : i32
    %9 = arith.cmpi ne, %8, %c0_i32_3 : i32
    scf.if %9 {
      %c0 = arith.constant 0 : index
      %c0_6 = arith.constant 0 : index
      %c0_7 = arith.constant 0 : index
      %16 = vector.load %arg4[%c0, %c0_6, %c0_7] : memref<3x2x32xf32, #tpu.memory_space<vmem>>, vector<1x2x32xf32>
      %17 = vector.shape_cast %16 : vector<1x2x32xf32> to vector<2x32xf32>
      %c0_i32_8 = arith.constant 0 : i32
      %18 = arith.cmpi eq, %arg1, %c0_i32_8 : i32
      %19 = arith.extui %18 : i1 to i32
      %c0_i32_9 = arith.constant 0 : i32
      %20 = arith.cmpi ne, %19, %c0_i32_9 : i32
      scf.if %20 {
        %c0_20 = arith.constant 0 : index
        %c0_21 = arith.constant 0 : index
        %47 = vector.load %arg2[%c0_20, %c0_21] : memref<128x32xf32, #tpu.memory_space<vmem>>, vector<128x32xf32>
        %48 = arith.truncf %47 : vector<128x32xf32> to vector<128x32xbf16>
        %c0_22 = arith.constant 0 : index
        %c0_23 = arith.constant 0 : index
        %49 = vector.load %arg9[%c0_22, %c0_23] : memref<128x32xbf16, #tpu.memory_space<vmem>>, vector<128x32xbf16>
        tpu.vector_store %arg9[%c0_22, %c0_23], %48 {strides = array<i32>} : memref<128x32xbf16, #tpu.memory_space<vmem>>, vector<128x32xbf16>,
        %50 = vector.extract_strided_slice %17 {offsets = [0, 0], sizes = [1, 32], strides = [1, 1]} : vector<2x32xf32> to vector<1x32xf32>
        %51 = vector.broadcast %50 : vector<1x32xf32> to vector<128x32xf32>
        %52 = arith.mulf %47, %51 : vector<128x32xf32>
        %cst_24 = arith.constant dense<0.000000e+00> : vector<128xf32>
        %53 = vector.multi_reduction <add>, %52, %cst_24 [1] : vector<128x32xf32> to vector<128xf32>
        %54 = vector.shape_cast %53 : vector<128xf32> to vector<128x1xf32>
        %55 = tpu.transpose %54, [1, 0] : vector<128x1xf32> -> vector<1x128xf32>
        %c0_25 = arith.constant 0 : index
        %c0_26 = arith.constant 0 : index
        %56 = vector.load %arg10[%c0_25, %c0_26] : memref<1x128xf32, #tpu.memory_space<vmem>>, vector<1x128xf32>
        tpu.vector_store %arg10[%c0_25, %c0_26], %55 {strides = array<i32>} : memref<1x128xf32, #tpu.memory_space<vmem>>, vector<1x128xf32>,
      } else {
      }
      %21 = arith.index_cast %1 : i32 to index
      %c0_10 = arith.constant 0 : index
      %22 = vector.load %arg2[%21, %c0_10] : memref<128x32xf32, #tpu.memory_space<vmem>>, vector<128x32xf32>
      %23 = vector.extract_strided_slice %17 {offsets = [1, 0], sizes = [1, 32], strides = [1, 1]} : vector<2x32xf32> to vector<1x32xf32>
      %24 = vector.broadcast %23 : vector<1x32xf32> to vector<128x32xf32>
      %25 = arith.mulf %22, %24 : vector<128x32xf32>
      %cst = arith.constant dense<0.000000e+00> : vector<128xf32>
      %26 = vector.multi_reduction <add>, %25, %cst [1] : vector<128x32xf32> to vector<128xf32>
      %27 = vector.shape_cast %26 : vector<128xf32> to vector<128x1xf32>
      %28 = arith.truncf %27 : vector<128x1xf32> to vector<128x1xbf16>
      %c0_11 = arith.constant 0 : index
      %c0_12 = arith.constant 0 : index
      %29 = vector.load %arg10[%c0_11, %c0_12] : memref<1x128xf32, #tpu.memory_space<vmem>>, vector<1x128xf32>
      %30 = arith.truncf %29 : vector<1x128xf32> to vector<1x128xbf16>
      %31 = vector.broadcast %28 : vector<128x1xbf16> to vector<128x128xbf16>
      %32 = vector.broadcast %30 : vector<1x128xbf16> to vector<128x128xbf16>
      %33 = arith.addf %31, %32 : vector<128x128xbf16>
      %34 = math.tanh %33 : vector<128x128xbf16>
      %35 = arith.index_cast %1 : i32 to index
      %c0_13 = arith.constant 0 : index
      %36 = vector.load %arg3[%35, %c0_13] : memref<128x128xbf16, #tpu.memory_space<vmem>>, vector<128x128xbf16>
      %37 = arith.mulf %36, %34 : vector<128x128xbf16>
      %c0_14 = arith.constant 0 : index
      %c0_15 = arith.constant 0 : index
      %38 = vector.load %arg9[%c0_14, %c0_15] : memref<128x32xbf16, #tpu.memory_space<vmem>>, vector<128x32xbf16>
      %cst_16 = arith.constant dense<0.000000e+00> : vector<128x32xf32>
      %39 = tpu.matmul %37, %38, %cst_16 {dimension_numbers = #tpu.dot_dimension_numbers<[1], [0], [0], [1], [0, 0, 1, 1], [], []>} : vector<128x128xbf16>, vector<128x32xbf16>, vector<128x32xf32> -> vector<128x32xf32>
      %40 = arith.index_cast %1 : i32 to index
      %c0_17 = arith.constant 0 : index
      %41 = vector.load %arg2[%40, %c0_17] : memref<128x32xf32, #tpu.memory_space<vmem>>, vector<128x32xf32>
      %cst_18 = arith.constant 1.000000e-01 : f32
      %42 = vector.broadcast %cst_18 : f32 to vector<128x32xf32>
      %43 = arith.mulf %42, %41 : vector<128x32xf32>
      %44 = arith.addf %39, %43 : vector<128x32xf32>
      %45 = arith.index_cast %1 : i32 to index
      %c0_19 = arith.constant 0 : index
      %46 = vector.load %arg8[%45, %c0_19] : memref<128x32xf32, #tpu.memory_space<vmem>>, vector<128x32xf32>
      tpu.vector_store %arg8[%45, %c0_19], %44 {strides = array<i32>} : memref<128x32xf32, #tpu.memory_space<vmem>>, vector<128x32xf32>,
    } else {
    }
    %c1_i32 = arith.constant 1 : i32
    %10 = arith.cmpi eq, %arg0, %c1_i32 : i32
    %11 = arith.extui %10 : i1 to i32
    %c0_i32_4 = arith.constant 0 : i32
    %12 = arith.cmpi ne, %11, %c0_i32_4 : i32
    scf.if %12 {
      %c1 = arith.constant 1 : index
      %c0 = arith.constant 0 : index
      %c0_6 = arith.constant 0 : index
      %16 = vector.load %arg4[%c1, %c0, %c0_6] : memref<3x2x32xf32, #tpu.memory_space<vmem>>, vector<1x2x32xf32>
      %17 = vector.shape_cast %16 : vector<1x2x32xf32> to vector<2x32xf32>
      %c0_i32_7 = arith.constant 0 : i32
      %18 = arith.cmpi eq, %arg1, %c0_i32_7 : i32
      %19 = arith.extui %18 : i1 to i32
      %c0_i32_8 = arith.constant 0 : i32
      %20 = arith.cmpi ne, %19, %c0_i32_8 : i32
      scf.if %20 {
        %c0_19 = arith.constant 0 : index
        %c0_20 = arith.constant 0 : index
        %47 = vector.load %arg8[%c0_19, %c0_20] : memref<128x32xf32, #tpu.memory_space<vmem>>, vector<128x32xf32>
        %48 = arith.truncf %47 : vector<128x32xf32> to vector<128x32xbf16>
        %c0_21 = arith.constant 0 : index
        %c0_22 = arith.constant 0 : index
        %49 = vector.load %arg9[%c0_21, %c0_22] : memref<128x32xbf16, #tpu.memory_space<vmem>>, vector<128x32xbf16>
        tpu.vector_store %arg9[%c0_21, %c0_22], %48 {strides = array<i32>} : memref<128x32xbf16, #tpu.memory_space<vmem>>, vector<128x32xbf16>,
        %50 = vector.extract_strided_slice %17 {offsets = [0, 0], sizes = [1, 32], strides = [1, 1]} : vector<2x32xf32> to vector<1x32xf32>
        %51 = vector.broadcast %50 : vector<1x32xf32> to vector<128x32xf32>
        %52 = arith.mulf %47, %51 : vector<128x32xf32>
        %cst_23 = arith.constant dense<0.000000e+00> : vector<128xf32>
        %53 = vector.multi_reduction <add>, %52, %cst_23 [1] : vector<128x32xf32> to vector<128xf32>
        %54 = vector.shape_cast %53 : vector<128xf32> to vector<128x1xf32>
        %55 = tpu.transpose %54, [1, 0] : vector<128x1xf32> -> vector<1x128xf32>
        %c0_24 = arith.constant 0 : index
        %c0_25 = arith.constant 0 : index
        %56 = vector.load %arg10[%c0_24, %c0_25] : memref<1x128xf32, #tpu.memory_space<vmem>>, vector<1x128xf32>
        tpu.vector_store %arg10[%c0_24, %c0_25], %55 {strides = array<i32>} : memref<1x128xf32, #tpu.memory_space<vmem>>, vector<1x128xf32>,
      } else {
      }
      %21 = arith.index_cast %1 : i32 to index
      %c0_9 = arith.constant 0 : index
      %22 = vector.load %arg8[%21, %c0_9] : memref<128x32xf32, #tpu.memory_space<vmem>>, vector<128x32xf32>
      %23 = vector.extract_strided_slice %17 {offsets = [1, 0], sizes = [1, 32], strides = [1, 1]} : vector<2x32xf32> to vector<1x32xf32>
      %24 = vector.broadcast %23 : vector<1x32xf32> to vector<128x32xf32>
      %25 = arith.mulf %22, %24 : vector<128x32xf32>
      %cst = arith.constant dense<0.000000e+00> : vector<128xf32>
      %26 = vector.multi_reduction <add>, %25, %cst [1] : vector<128x32xf32> to vector<128xf32>
      %27 = vector.shape_cast %26 : vector<128xf32> to vector<128x1xf32>
      %28 = arith.truncf %27 : vector<128x1xf32> to vector<128x1xbf16>
      %c0_10 = arith.constant 0 : index
      %c0_11 = arith.constant 0 : index
      %29 = vector.load %arg10[%c0_10, %c0_11] : memref<1x128xf32, #tpu.memory_space<vmem>>, vector<1x128xf32>
      %30 = arith.truncf %29 : vector<1x128xf32> to vector<1x128xbf16>
      %31 = vector.broadcast %28 : vector<128x1xbf16> to vector<128x128xbf16>
      %32 = vector.broadcast %30 : vector<1x128xbf16> to vector<128x128xbf16>
      %33 = arith.addf %31, %32 : vector<128x128xbf16>
      %34 = math.tanh %33 : vector<128x128xbf16>
      %35 = arith.index_cast %1 : i32 to index
      %c0_12 = arith.constant 0 : index
      %36 = vector.load %arg3[%35, %c0_12] : memref<128x128xbf16, #tpu.memory_space<vmem>>, vector<128x128xbf16>
      %37 = arith.mulf %36, %34 : vector<128x128xbf16>
      %c0_13 = arith.constant 0 : index
      %c0_14 = arith.constant 0 : index
      %38 = vector.load %arg9[%c0_13, %c0_14] : memref<128x32xbf16, #tpu.memory_space<vmem>>, vector<128x32xbf16>
      %cst_15 = arith.constant dense<0.000000e+00> : vector<128x32xf32>
      %39 = tpu.matmul %37, %38, %cst_15 {dimension_numbers = #tpu.dot_dimension_numbers<[1], [0], [0], [1], [0, 0, 1, 1], [], []>} : vector<128x128xbf16>, vector<128x32xbf16>, vector<128x32xf32> -> vector<128x32xf32>
      %40 = arith.index_cast %1 : i32 to index
      %c0_16 = arith.constant 0 : index
      %41 = vector.load %arg2[%40, %c0_16] : memref<128x32xf32, #tpu.memory_space<vmem>>, vector<128x32xf32>
      %cst_17 = arith.constant 1.000000e-01 : f32
      %42 = vector.broadcast %cst_17 : f32 to vector<128x32xf32>
      %43 = arith.mulf %42, %41 : vector<128x32xf32>
      %44 = arith.addf %39, %43 : vector<128x32xf32>
      %45 = arith.index_cast %1 : i32 to index
      %c0_18 = arith.constant 0 : index
      %46 = vector.load %arg7[%45, %c0_18] : memref<128x32xf32, #tpu.memory_space<vmem>>, vector<128x32xf32>
      tpu.vector_store %arg7[%45, %c0_18], %44 {strides = array<i32>} : memref<128x32xf32, #tpu.memory_space<vmem>>, vector<128x32xf32>,
    } else {
    }
    %c2_i32 = arith.constant 2 : i32
    %13 = arith.cmpi eq, %arg0, %c2_i32 : i32
    %14 = arith.extui %13 : i1 to i32
    %c0_i32_5 = arith.constant 0 : i32
    %15 = arith.cmpi ne, %14, %c0_i32_5 : i32
    scf.if %15 {
      %c2 = arith.constant 2 : index
      %c0 = arith.constant 0 : index
      %c0_6 = arith.constant 0 : index
      %16 = vector.load %arg4[%c2, %c0, %c0_6] : memref<3x2x32xf32, #tpu.memory_space<vmem>>, vector<1x2x32xf32>
      %17 = vector.shape_cast %16 : vector<1x2x32xf32> to vector<2x32xf32>
      %c0_i32_7 = arith.constant 0 : i32
      %18 = arith.cmpi eq, %arg1, %c0_i32_7 : i32
      %19 = arith.extui %18 : i1 to i32
      %c0_i32_8 = arith.constant 0 : i32
      %20 = arith.cmpi ne, %19, %c0_i32_8 : i32
      scf.if %20 {
        %c0_26 = arith.constant 0 : index
        %c0_27 = arith.constant 0 : index
        %53 = vector.load %arg7[%c0_26, %c0_27] : memref<128x32xf32, #tpu.memory_space<vmem>>, vector<128x32xf32>
        %54 = arith.truncf %53 : vector<128x32xf32> to vector<128x32xbf16>
        %c0_28 = arith.constant 0 : index
        %c0_29 = arith.constant 0 : index
        %55 = vector.load %arg9[%c0_28, %c0_29] : memref<128x32xbf16, #tpu.memory_space<vmem>>, vector<128x32xbf16>
        tpu.vector_store %arg9[%c0_28, %c0_29], %54 {strides = array<i32>} : memref<128x32xbf16, #tpu.memory_space<vmem>>, vector<128x32xbf16>,
        %56 = vector.extract_strided_slice %17 {offsets = [0, 0], sizes = [1, 32], strides = [1, 1]} : vector<2x32xf32> to vector<1x32xf32>
        %57 = vector.broadcast %56 : vector<1x32xf32> to vector<128x32xf32>
        %58 = arith.mulf %53, %57 : vector<128x32xf32>
        %cst_30 = arith.constant dense<0.000000e+00> : vector<128xf32>
        %59 = vector.multi_reduction <add>, %58, %cst_30 [1] : vector<128x32xf32> to vector<128xf32>
        %60 = vector.shape_cast %59 : vector<128xf32> to vector<128x1xf32>
        %61 = tpu.transpose %60, [1, 0] : vector<128x1xf32> -> vector<1x128xf32>
        %c0_31 = arith.constant 0 : index
        %c0_32 = arith.constant 0 : index
        %62 = vector.load %arg10[%c0_31, %c0_32] : memref<1x128xf32, #tpu.memory_space<vmem>>, vector<1x128xf32>
        tpu.vector_store %arg10[%c0_31, %c0_32], %61 {strides = array<i32>} : memref<1x128xf32, #tpu.memory_space<vmem>>, vector<1x128xf32>,
      } else {
      }
      %21 = arith.index_cast %1 : i32 to index
      %c0_9 = arith.constant 0 : index
      %22 = vector.load %arg7[%21, %c0_9] : memref<128x32xf32, #tpu.memory_space<vmem>>, vector<128x32xf32>
      %23 = vector.extract_strided_slice %17 {offsets = [1, 0], sizes = [1, 32], strides = [1, 1]} : vector<2x32xf32> to vector<1x32xf32>
      %24 = vector.broadcast %23 : vector<1x32xf32> to vector<128x32xf32>
      %25 = arith.mulf %22, %24 : vector<128x32xf32>
      %cst = arith.constant dense<0.000000e+00> : vector<128xf32>
      %26 = vector.multi_reduction <add>, %25, %cst [1] : vector<128x32xf32> to vector<128xf32>
      %27 = vector.shape_cast %26 : vector<128xf32> to vector<128x1xf32>
      %28 = arith.truncf %27 : vector<128x1xf32> to vector<128x1xbf16>
      %c0_10 = arith.constant 0 : index
      %c0_11 = arith.constant 0 : index
      %29 = vector.load %arg10[%c0_10, %c0_11] : memref<1x128xf32, #tpu.memory_space<vmem>>, vector<1x128xf32>
      %30 = arith.truncf %29 : vector<1x128xf32> to vector<1x128xbf16>
      %31 = vector.broadcast %28 : vector<128x1xbf16> to vector<128x128xbf16>
      %32 = vector.broadcast %30 : vector<1x128xbf16> to vector<128x128xbf16>
      %33 = arith.addf %31, %32 : vector<128x128xbf16>
      %34 = math.tanh %33 : vector<128x128xbf16>
      %35 = arith.index_cast %1 : i32 to index
      %c0_12 = arith.constant 0 : index
      %36 = vector.load %arg3[%35, %c0_12] : memref<128x128xbf16, #tpu.memory_space<vmem>>, vector<128x128xbf16>
      %37 = arith.mulf %36, %34 : vector<128x128xbf16>
      %c0_13 = arith.constant 0 : index
      %c0_14 = arith.constant 0 : index
      %38 = vector.load %arg9[%c0_13, %c0_14] : memref<128x32xbf16, #tpu.memory_space<vmem>>, vector<128x32xbf16>
      %cst_15 = arith.constant dense<0.000000e+00> : vector<128x32xf32>
      %39 = tpu.matmul %37, %38, %cst_15 {dimension_numbers = #tpu.dot_dimension_numbers<[1], [0], [0], [1], [0, 0, 1, 1], [], []>} : vector<128x128xbf16>, vector<128x32xbf16>, vector<128x32xf32> -> vector<128x32xf32>
      %40 = arith.index_cast %1 : i32 to index
      %c0_16 = arith.constant 0 : index
      %41 = vector.load %arg2[%40, %c0_16] : memref<128x32xf32, #tpu.memory_space<vmem>>, vector<128x32xf32>
      %cst_17 = arith.constant 1.000000e-01 : f32
      %42 = vector.broadcast %cst_17 : f32 to vector<128x32xf32>
      %43 = arith.mulf %42, %41 : vector<128x32xf32>
      %44 = arith.addf %39, %43 : vector<128x32xf32>
      %45 = arith.index_cast %1 : i32 to index
      %c0_18 = arith.constant 0 : index
      %46 = vector.load %arg8[%45, %c0_18] : memref<128x32xf32, #tpu.memory_space<vmem>>, vector<128x32xf32>
      tpu.vector_store %arg8[%45, %c0_18], %44 {strides = array<i32>} : memref<128x32xf32, #tpu.memory_space<vmem>>, vector<128x32xf32>,
      %c0_19 = arith.constant 0 : index
      %c0_20 = arith.constant 0 : index
      %47 = vector.load %arg6[%c0_19, %c0_20] : memref<2x32xf32, #tpu.memory_space<vmem>>, vector<2x32xf32>
      %c0_21 = arith.constant 0 : index
      %c0_22 = arith.constant 0 : index
      %48 = vector.load %arg5[%c0_21, %c0_22] : memref<2x128xbf16, #tpu.memory_space<vmem>>, vector<2x128xbf16>
      %49 = arith.truncf %44 : vector<128x32xf32> to vector<128x32xbf16>
      %cst_23 = arith.constant dense<0.000000e+00> : vector<2x32xf32>
      %50 = tpu.matmul %48, %49, %cst_23 {dimension_numbers = #tpu.dot_dimension_numbers<[1], [0], [0], [1], [0, 0, 1, 1], [], []>} : vector<2x128xbf16>, vector<128x32xbf16>, vector<2x32xf32> -> vector<2x32xf32>
      %51 = arith.addf %47, %50 : vector<2x32xf32>
      %c0_24 = arith.constant 0 : index
      %c0_25 = arith.constant 0 : index
      %52 = vector.load %arg6[%c0_24, %c0_25] : memref<2x32xf32, #tpu.memory_space<vmem>>, vector<2x32xf32>
      tpu.vector_store %arg6[%c0_24, %c0_25], %51 {strides = array<i32>} : memref<2x32xf32, #tpu.memory_space<vmem>>, vector<2x32xf32>,
    } else {
    }
    return
  }
  func.func @transform_0(%arg0: i32, %arg1: i32) -> (i32, i32) {
    %c0_i32 = arith.constant 0 : i32
    %c0_i32_0 = arith.constant 0 : i32
    %c0_i32_1 = arith.constant 0 : i32
    return %c0_i32, %c0_i32_0 : i32, i32
  }
  func.func @transform_1(%arg0: i32, %arg1: i32) -> (i32, i32) {
    %c0_i32 = arith.constant 0 : i32
    %c0_i32_0 = arith.constant 0 : i32
    %c0_i32_1 = arith.constant 0 : i32
    return %c0_i32, %c0_i32_0 : i32, i32
  }
  func.func @transform_2(%arg0: i32, %arg1: i32) -> (i32, i32, i32) {
    %c0_i32 = arith.constant 0 : i32
    %c0_i32_0 = arith.constant 0 : i32
    %c0_i32_1 = arith.constant 0 : i32
    %c0_i32_2 = arith.constant 0 : i32
    return %c0_i32, %c0_i32_0, %c0_i32_1 : i32, i32, i32
  }
  func.func @transform_3(%arg0: i32, %arg1: i32) -> (i32, i32) {
    %c0_i32 = arith.constant 0 : i32
    %c0_i32_0 = arith.constant 0 : i32
    return %c0_i32, %arg1 : i32, i32
  }
  func.func @transform_4(%arg0: i32, %arg1: i32) -> (i32, i32) {
    %c0_i32 = arith.constant 0 : i32
    %c0_i32_0 = arith.constant 0 : i32
    %c0_i32_1 = arith.constant 0 : i32
    return %c0_i32, %c0_i32_0 : i32, i32
  }
}

</mosaic_0001>

<bundles_post_ra>
// kernel: tpu_custom_call.1
= control target key start
LH: loop header
LB: loop body
LE: loop exit
PB: predicated region body
PF: predicated region fallthrough
CT: control target
= control target key end

     0   :  { %9 = vsyncpa [#allocation7], 0  ;;  %s2944_s15 = smov 0   ;;  %s2946_s16 = smov 0   ;;  %s3860_s0 = inlined_call_operand.vmem [shape: f32[128,32], index: 0, kind: input, shape index: {}]   ;;  %s3861_s1 = inlined_call_operand.vmem [shape: bf16[128,128], index: 1, kind: input, shape index: {}]   ;;  %s3862_s2 = inlined_call_operand.vmem [shape: f32[3,2,32], index: 2, kind: input, shape index: {}]   ;;  %s3863_s3 = inlined_call_operand.vmem [shape: bf16[2,128], index: 3, kind: input, shape index: {}]   ;;  %s3864_s4 = inlined_call_operand.hbm [shape: f32[2,32], index: 4, kind: output, shape index: {}]  }
   0x1   :  { %s2948_s17 = smov 0  }
   0x2 LB: > { %s2345_s18 = sadd.s32 4294967295, %s2913_s17   ;;  %s27_s19 = sadd.s32 1, %s2909_s16  ;;  %s2913_s17 = sphi %s2948_s17, %s15_s17   ;;  %s2909_s16 = sphi %s2946_s16, %s3867_s16   ;;  %s2905_s15 = sphi %s2944_s15, %s3866_s15  }
   0x3   : > { %p29_p0 = scmp.ge.s32.totalorder %s27_s19, 3  ;;  %p2348_p1 = scmp.ge.s32.totalorder %s2913_s17, 1 }
   0x4   : > { %p168_p2 = scmp.lt.s32.totalorder %s2913_s17, 4 }
   0x5   : > { %s3869_s19 = smov (%p29_p0, %s27_s19), 0 }
   0x6   : > { %p169_p3 = pnand %p2348_p1, %p168_p2 }
   0x7   : > { %p192_p4 = scmp.eq.s32.totalorder (!%p169_p3), %s2905_s15, 0 }
   0x8   : > { %172 = sbr.rel (%p169_p3) target bundleno = 1872 (0x750), region = 36 }
   0xd   : > { %197 = sbr.rel (!%p192_p4) target bundleno = 18 (0x12), region = 40  ;;  %vm198_vm0 = vcmask (%p192_p4), 254976   ;;  %v2915_v0 = vmov (%p192_p4), 0.0  }
   0xe   : > { %199 = vst.msk [vmem:[#allocation6] sm:$0x3] (%p192_p4), %vm198_vm0, %v2915_v0 }
  0x12 PF: > { %p2350_p5 = scmp.ne.s32.totalorder %s2905_s15, 0 }
  0x14   : > { %202 = sbr.rel (%p2350_p5) target bundleno = 550 (0x226), region = 44 }
  0x19   : > { %v2970_v1 = vld [vmem:[%s3860_s0] sm:$0xff]  ;;  %v304_v2 = vlaneseq  ;;  %v2975_v3 = vld [vmem:[%s3860_s0 + $0x8] sm:$0xff]  ;;  %vm287_vm1 = vcmask 257024   ;;  %v2989_v7 = vld [vmem:[%s3860_s0 + $0x10] sm:$0xff]  ;;  %vm324_vm2 = vcmask 261120  }
  0x1a   : > { %v2980_v4 = vld [vmem:[%s3862_s2] sm:$0x3]  ;;  %v2504_v5 = vpack.c.bf16 %v2970_v1, %v2970_v1  ;;  %v2505_v6 = vpack.c.bf16 %v2975_v3, %v2975_v3  ;;  %v2994_v8 = vld [vmem:[%s3860_s0 + $0x18] sm:$0xff]  ;;  %v2506_v11 = vpack.c.bf16 %v2989_v7, %v2989_v7  ;;  %v3012_v14 = vld [vmem:[%s3860_s0 + $0x28] sm:$0xff] }
  0x1b   : > { %v2999_v9 = vld [vmem:[%s3860_s0 + $0x20] sm:$0xff]  ;;  %v3001_v10 = vshrl.u32 %v304_v2, 7  ;;  %v2507_v12 = vpack.c.bf16 %v2994_v8, %v2994_v8  ;;  %v3017_v15 = vld [vmem:[%s3860_s0 + $0x30] sm:$0xff]  ;;  %v3022_v16 = vld [vmem:[%s3860_s0 + $0x38] sm:$0xff]  ;;  %v2509_v17 = vpack.c.bf16 %v3012_v14, %v3012_v14 }
  0x1c   : > { %v2508_v13 = vpack.c.bf16 %v2999_v9, %v2999_v9  ;;  %288 = vst.msk [vmem:[#allocation4] sm:$0xf] %vm287_vm1, %v2504_v5  ;;  %289 = vst.msk [vmem:[#allocation4 + $0x4] sm:$0xf] %vm287_vm1, %v2505_v6  ;;  %v2510_v18 = vpack.c.bf16 %v3017_v15, %v3017_v15  ;;  %v2511_v19 = vpack.c.bf16 %v3022_v16, %v3022_v16  ;;  %v3035_v20 = vld [vmem:[%s3860_s0 + $0x40] sm:$0xff]  ;;  %v3040_v21 = vld [vmem:[%s3860_s0 + $0x48] sm:$0xff] }
  0x1d   : > { %v3045_v22 = vld [vmem:[%s3860_s0 + $0x50] sm:$0xff]  ;;  %v306_v23 = vsub.s32 0, %v3001_v10  ;;  %290 = vst.msk [vmem:[#allocation4 + $0x8] sm:$0xf] %vm287_vm1, %v2506_v11  ;;  %291 = vst.msk [vmem:[#allocation4 + $0xc] sm:$0xf] %vm287_vm1, %v2507_v12  ;;  %v2512_v24 = vpack.c.bf16 %v3035_v20, %v3035_v20  ;;  %v2513_v25 = vpack.c.bf16 %v3040_v21, %v3040_v21 }
  0x1e   : > { %292 = vst.msk [vmem:[#allocation4 + $0x10] sm:$0xf] %vm287_vm1, %v2508_v13  ;;  %v2514_v26 = vpack.c.bf16 %v3045_v22, %v3045_v22  ;;  %v3060_v27 = vld [vmem:[%s3860_s0 + $0x58] sm:$0xff]  ;;  %v3065_v28 = vld [vmem:[%s3860_s0 + $0x60] sm:$0xff]  ;;  %v3070_v29 = vld [vmem:[%s3860_s0 + $0x68] sm:$0xff]  ;;  %v425_v60 = vsub.s32 1, %v3001_v10 }
  0x1f   : > { %293 = vst.msk [vmem:[#allocation4 + $0x14] sm:$0xf] %vm287_vm1, %v2509_v17  ;;  %294 = vst.msk [vmem:[#allocation4 + $0x18] sm:$0xf] %vm287_vm1, %v2510_v18  ;;  %v2515_v30 = vpack.c.bf16 %v3060_v27, %v3060_v27  ;;  %v2516_v31 = vpack.c.bf16 %v3065_v28, %v3065_v28  ;;  %v2517_v32 = vpack.c.bf16 %v3070_v29, %v3070_v29  ;;  %v3084_v33 = vld [vmem:[%s3860_s0 + $0x70] sm:$0xff]  ;;  %v3089_v34 = vld [vmem:[%s3860_s0 + $0x78] sm:$0xff] }
  0x20   : > { %295 = vst.msk [vmem:[#allocation4 + $0x1c] sm:$0xf] %vm287_vm1, %v2511_v19  ;;  %v307_v35 = vrot.slane %v2980_v4, %v306_v23  ;;  %296 = vst.msk [vmem:[#allocation4 + $0x20] sm:$0xf] %vm287_vm1, %v2512_v24  ;;  %v2518_v36 = vpack.c.bf16 %v3084_v33, %v3084_v33  ;;  %v2519_v37 = vpack.c.bf16 %v3089_v34, %v3089_v34 }
  0x21   : > { %297 = vst.msk [vmem:[#allocation4 + $0x24] sm:$0xf] %vm287_vm1, %v2513_v25  ;;  %298 = vst.msk [vmem:[#allocation4 + $0x28] sm:$0xf] %vm287_vm1, %v2514_v26  ;;  %v426_v2 = vrot.slane %v2980_v4, %v425_v60 }
  0x22   : > { %299 = vst.msk [vmem:[#allocation4 + $0x2c] sm:$0xf] %vm287_vm1, %v2515_v30  ;;  %300 = vst.msk [vmem:[#allocation4 + $0x30] sm:$0xf] %vm287_vm1, %v2516_v31  ;;  %v308_v38 = vmul.f32 %v307_v35, %v2970_v1  ;;  %v309_v39 = vmul.f32 %v307_v35, %v2975_v3  ;;  %v310_v40 = vmul.f32 %v307_v35, %v2989_v7 }
  0x23   : > { %301 = vst.msk [vmem:[#allocation4 + $0x34] sm:$0xf] %vm287_vm1, %v2517_v32  ;;  %v311_v41 = vmul.f32 %v307_v35, %v2994_v8  ;;  %302 = vst.msk [vmem:[#allocation4 + $0x38] sm:$0xf] %vm287_vm1, %v2518_v36  ;;  %v312_v46 = vmul.f32 %v307_v35, %v2999_v9  ;;  %v313_v47 = vmul.f32 %v307_v35, %v3012_v14 }
  0x24   : > { %303 = vst.msk [vmem:[#allocation4 + $0x3c] sm:$0xf] %vm287_vm1, %v2519_v37  ;;  %v325_v42 = vsel %vm324_vm2, %v308_v38, 0.0  ;;  %v331_v43 = vsel %vm324_vm2, %v310_v40, 0.0  ;;  %v328_v44 = vsel %vm324_vm2, %v309_v39, 0.0  ;;  %v314_v50 = vmul.f32 %v307_v35, %v3017_v15 }
  0x25   : > { %326 = vadd.xlane.f32.xlu0 %v325_v42  ;;  %332 = vadd.xlane.f32.xlu1 %v331_v43  ;;  %v334_v45 = vsel %vm324_vm2, %v311_v41, 0.0  ;;  %v337_v48 = vsel %vm324_vm2, %v312_v46, 0.0  ;;  %v340_v49 = vsel %vm324_vm2, %v313_v47, 0.0  ;;  %v315_v51 = vmul.f32 %v307_v35, %v3022_v16 }
  0x26   : > { %v343_v52 = vsel %vm324_vm2, %v314_v50, 0.0  ;;  %v316_v54 = vmul.f32 %v307_v35, %v3035_v20  ;;  %v317_v55 = vmul.f32 %v307_v35, %v3040_v21  ;;  %v318_v58 = vmul.f32 %v307_v35, %v3045_v22 }
  0x27   : > { %v346_v53 = vsel %vm324_vm2, %v315_v51, 0.0  ;;  %v319_v59 = vmul.f32 %v307_v35, %v3060_v27  ;;  %v320_v63 = vmul.f32 %v307_v35, %v3065_v28  ;;  %v321_v0 = vmul.f32 %v307_v35, %v3070_v29 }
  0x28   : > { %v349_v56 = vsel %vm324_vm2, %v316_v54, 0.0  ;;  %v352_v57 = vsel %vm324_vm2, %v317_v55, 0.0  ;;  %v355_v61 = vsel %vm324_vm2, %v318_v58, 0.0  ;;  %v322_v11 = vmul.f32 %v307_v35, %v3084_v33 }
  0x29   : > { %329 = vadd.xlane.f32.xlu0 %v328_v44  ;;  %335 = vadd.xlane.f32.xlu1 %v334_v45  ;;  %v358_v62 = vsel %vm324_vm2, %v319_v59, 0.0  ;;  %v361_v5 = vsel %vm324_vm2, %v320_v63, 0.0  ;;  %v364_v6 = vsel %vm324_vm2, %v321_v0, 0.0  ;;  %v323_v12 = vmul.f32 %v307_v35, %v3089_v34  ;;  %v2793_v0 = vld [vmem:[#allocation4 + $0x28] sm:$0xff]  }
  0x2a   : > { %v367_v13 = vsel %vm324_vm2, %v322_v11, 0.0  ;;  %v428_v18 = vmul.f32 %v426_v2, %v2975_v3  ;;  %v427_v19 = vmul.f32 %v426_v2, %v2970_v1  ;;  %v436_v25 = vmul.f32 %v426_v2, %v3040_v21 }
  0x2b   : > { %v370_v17 = vsel %vm324_vm2, %v323_v12, 0.0  ;;  %v435_v26 = vmul.f32 %v426_v2, %v3035_v20  ;;  %v430_v32 = vmul.f32 %v426_v2, %v2994_v8  ;;  %v429_v35 = vmul.f32 %v426_v2, %v2989_v7  ;;  %v2791_v59 = vld [vmem:[#allocation4 + $0x38] sm:$0xff]   ;;  %v2796_v12 = vld [vmem:[#allocation4 + $0x10] sm:$0xff]  }
  0x2c   : > { %v447_v4 = vsel %vm324_vm2, %v428_v18, 0.0  ;;  %v444_v24 = vsel %vm324_vm2, %v427_v19, 0.0  ;;  %v471_v30 = vsel %vm324_vm2, %v436_v25, 0.0  ;;  %v438_v38 = vmul.f32 %v426_v2, %v3060_v27  ;;  %2609 = vmatprep.subr.bf16.mxu0 %v2791_v59  ;;  %2725 = vmatprep.subr.bf16.mxu1 %v2791_v59  ;;  %v2798_v19 = vld [vmem:[#allocation4] sm:$0xff]  }
  0x2d   : > { %338 = vadd.xlane.f32.xlu0 %v337_v48  ;;  %341 = vadd.xlane.f32.xlu1 %v340_v49  ;;  %v468_v31 = vsel %vm324_vm2, %v435_v26, 0.0  ;;  %v453_v36 = vsel %vm324_vm2, %v430_v32, 0.0  ;;  %v450_v37 = vsel %vm324_vm2, %v429_v35, 0.0  ;;  %v437_v39 = vmul.f32 %v426_v2, %v3045_v22 }
  0x2e   : > { %v477_v40 = vsel %vm324_vm2, %v438_v38, 0.0  ;;  %v432_v42 = vmul.f32 %v426_v2, %v3012_v14  ;;  %v431_v43 = vmul.f32 %v426_v2, %v2999_v9  ;;  %v440_v46 = vmul.f32 %v426_v2, %v3070_v29  ;;  %2610 = vmatpush3.bf16.msra.mxu0 %v2791_v59  ;;  %2733 = vmatpush3.bf16.msra.mxu1 %v2791_v59 }
  0x2f   : > { %v474_v41 = vsel %vm324_vm2, %v437_v39, 0.0  ;;  %v439_v47 = vmul.f32 %v426_v2, %v3065_v28  ;;  %v434_v50 = vmul.f32 %v426_v2, %v3022_v16  ;;  %v433_v51 = vmul.f32 %v426_v2, %v3017_v15 }
  0x30   : > { %v459_v44 = vsel %vm324_vm2, %v432_v42, 0.0  ;;  %v456_v45 = vsel %vm324_vm2, %v431_v43, 0.0  ;;  %v483_v48 = vsel %vm324_vm2, %v440_v46, 0.0  ;;  %v442_v54 = vmul.f32 %v426_v2, %v3089_v34 }
  0x31   : > { %344 = vadd.xlane.f32.xlu0 %v343_v52  ;;  %347 = vadd.xlane.f32.xlu1 %v346_v53  ;;  %v480_v49 = vsel %vm324_vm2, %v439_v47, 0.0  ;;  %v465_v52 = vsel %vm324_vm2, %v434_v50, 0.0  ;;  %v462_v53 = vsel %vm324_vm2, %v433_v51, 0.0  ;;  %v441_v55 = vmul.f32 %v426_v2, %v3084_v33  ;;  %v2794_v2 = vld [vmem:[#allocation4 + $0x20] sm:$0xff]  }
  0x35   : > { %350 = vadd.xlane.f32.xlu0 %v349_v56  ;;  %353 = vadd.xlane.f32.xlu1 %v352_v57  ;;  %v489_v56 = vsel %vm324_vm2, %v442_v54, 0.0  ;;  %v486_v57 = vsel %vm324_vm2, %v441_v55, 0.0 }
  0x39   : > { %356 = vadd.xlane.f32.xlu0 %v355_v61  ;;  %359 = vadd.xlane.f32.xlu1 %v358_v62  ;;  %v2792_v62 = vld [vmem:[#allocation4 + $0x30] sm:$0xff]  }
  0x3a   : > { %2611 = vmatprep.subr.bf16.mxu0 %v2792_v62  ;;  %2726 = vmatprep.subr.bf16.mxu1 %v2792_v62 }
  0x3b   : > { %2612 = vmatpush3.bf16.msra.mxu0 %v2792_v62  ;;  %2734 = vmatpush3.bf16.msra.mxu1 %v2792_v62 }
  0x3c   : > { %2613 = vmatprep.subr.bf16.mxu0 %v2793_v0  ;;  %2727 = vmatprep.subr.bf16.mxu1 %v2793_v0 }
  0x3d   : > { %362 = vadd.xlane.f32.xlu0 %v361_v5  ;;  %365 = vadd.xlane.f32.xlu1 %v364_v6  ;;  %v2795_v6 = vld [vmem:[#allocation4 + $0x18] sm:$0xff]  }
  0x3f   : > { %2614 = vmatpush3.bf16.msra.mxu0 %v2793_v0  ;;  %2735 = vmatpush3.bf16.msra.mxu1 %v2793_v0 }
  0x40   : > { %2615 = vmatprep.subr.bf16.mxu0 %v2794_v2  ;;  %2728 = vmatprep.subr.bf16.mxu1 %v2794_v2 }
  0x41   : > { %368 = vadd.xlane.f32.xlu0 %v367_v13  ;;  %371 = vadd.xlane.f32.xlu1 %v370_v17  ;;  %v2797_v17 = vld [vmem:[#allocation4 + $0x8] sm:$0xff]  }
  0x43   : > { %2616 = vmatpush3.bf16.msra.mxu0 %v2794_v2  ;;  %2736 = vmatpush3.bf16.msra.mxu1 %v2794_v2 }
  0x44   : > { %2617 = vmatprep.subr.bf16.mxu0 %v2795_v6  ;;  %2729 = vmatprep.subr.bf16.mxu1 %v2795_v6 }
  0x45   : > { %448 = vadd.xlane.f32.xlu1 %v447_v4  ;;  %445 = vadd.xlane.f32.xlu0 %v444_v24 }
  0x47   : > { %2618 = vmatpush3.bf16.msra.mxu0 %v2795_v6  ;;  %2737 = vmatpush3.bf16.msra.mxu1 %v2795_v6 }
  0x48   : > { %2619 = vmatprep.subr.bf16.mxu0 %v2796_v12  ;;  %2730 = vmatprep.subr.bf16.mxu1 %v2796_v12 }
  0x49   : > { %472 = vadd.xlane.f32.xlu1 %v471_v30  ;;  %469 = vadd.xlane.f32.xlu0 %v468_v31 }
  0x4b   : > { %2620 = vmatpush3.bf16.msra.mxu0 %v2796_v12  ;;  %2738 = vmatpush3.bf16.msra.mxu1 %v2796_v12 }
  0x4c   : > { %2621 = vmatprep.subr.bf16.mxu0 %v2797_v17  ;;  %2731 = vmatprep.subr.bf16.mxu1 %v2797_v17 }
  0x4d   : > { %454 = vadd.xlane.f32.xlu1 %v453_v36  ;;  %451 = vadd.xlane.f32.xlu0 %v450_v37 }
  0x4f   : > { %2622 = vmatpush3.bf16.msra.mxu0 %v2797_v17  ;;  %2739 = vmatpush3.bf16.msra.mxu1 %v2797_v17 }
  0x50   : > { %2623 = vmatprep.subr.bf16.mxu0 %v2798_v19  ;;  %2732 = vmatprep.subr.bf16.mxu1 %v2798_v19 }
  0x51   : > { %478 = vadd.xlane.f32.xlu1 %v477_v40  ;;  %475 = vadd.xlane.f32.xlu0 %v474_v41 }
  0x53   : > { %2624 = vmatpush3.bf16.msra.mxu0 %v2798_v19  ;;  %2740 = vmatpush3.bf16.msra.mxu1 %v2798_v19  ;;  %v530_v19 = vld [vmem:[%s3861_s1 + $0x4] sm:$0xf] }
  0x55   : > { %460 = vadd.xlane.f32.xlu1 %v459_v44  ;;  %457 = vadd.xlane.f32.xlu0 %v456_v45 }
  0x59   : > { %484 = vadd.xlane.f32.xlu1 %v483_v48  ;;  %481 = vadd.xlane.f32.xlu0 %v480_v49 }
  0x5d   : > { %466 = vadd.xlane.f32.xlu1 %v465_v52  ;;  %463 = vadd.xlane.f32.xlu0 %v462_v53 }
  0x61   : > { %490 = vadd.xlane.f32.xlu1 %v489_v56  ;;  %487 = vadd.xlane.f32.xlu0 %v486_v57 }
  0xae   : > { %v327_v58 = vpop.xlane.xlu0 %326  ;;  %v333_v61 = vpop.xlane.xlu1 %332 }
  0xaf   : > { %373 = vxpose.xlu0.b32.start [1/16] (narrow) %v327_v58, 8 }
  0xb2   : > { %v330_v60 = vpop.xlane.xlu0 %329  ;;  %v336_v63 = vpop.xlane.xlu1 %335 }
  0xb3   : > { %374 = vxpose.xlu0.b32.cont [2/16] (narrow) %v330_v60, 8 }
  0xb6   : > { %v339_v5 = vpop.xlane.xlu0 %338  ;;  %v342_v11 = vpop.xlane.xlu1 %341 }
  0xb7   : > { %375 = vxpose.xlu0.b32.cont [3/16] (narrow) %v333_v61, 8 }
  0xba   : > { %v345_v13 = vpop.xlane.xlu0 %344  ;;  %v348_v18 = vpop.xlane.xlu1 %347 }
  0xbb   : > { %376 = vxpose.xlu0.b32.cont [4/16] (narrow) %v336_v63, 8 }
  0xbe   : > { %v351_v4 = vpop.xlane.xlu0 %350  ;;  %v354_v24 = vpop.xlane.xlu1 %353 }
  0xbf   : > { %377 = vxpose.xlu0.b32.cont [5/16] (narrow) %v339_v5, 8 }
  0xc2   : > { %v357_v25 = vpop.xlane.xlu0 %356  ;;  %v360_v26 = vpop.xlane.xlu1 %359 }
  0xc3   : > { %378 = vxpose.xlu0.b32.cont [6/16] (narrow) %v342_v11, 8 }
  0xc6   : > { %v363_v30 = vpop.xlane.xlu0 %362  ;;  %v366_v31 = vpop.xlane.xlu1 %365 }
  0xc7   : > { %379 = vxpose.xlu0.b32.cont [7/16] (narrow) %v345_v13, 8 }
  0xca   : > { %v369_v32 = vpop.xlane.xlu0 %368  ;;  %v372_v35 = vpop.xlane.xlu1 %371 }
  0xcb   : > { %380 = vxpose.xlu0.b32.cont [8/16] (narrow) %v348_v18, 8 }
  0xce   : > { %v446_v36 = vpop.xlane.xlu0 %445  ;;  %v449_v40 = vpop.xlane.xlu1 %448 }
  0xcf   : > { %381 = vxpose.xlu0.b32.cont [9/16] (narrow) %v351_v4, 8  ;;  %v492_v55 = vpack.c.bf16 %v449_v40, %v446_v36  ;;  %v531_v36 = vld [vmem:[%s3861_s1 + $0x8] sm:$0xf] }
  0xd2   : > { %v470_v37 = vpop.xlane.xlu0 %469  ;;  %v473_v42 = vpop.xlane.xlu1 %472 }
  0xd3   : > { %382 = vxpose.xlu0.b32.cont [10/16] (narrow) %v354_v24, 8  ;;  %v496_v56 = vpack.c.bf16 %v473_v42, %v470_v37  ;;  %v532_v37 = vld [vmem:[%s3861_s1 + $0xc] sm:$0xf] }
  0xd6   : > { %v452_v38 = vpop.xlane.xlu0 %451  ;;  %v455_v44 = vpop.xlane.xlu1 %454 }
  0xd7   : > { %383 = vxpose.xlu0.b32.cont [11/16] (narrow) %v357_v25, 8  ;;  %v493_v57 = vpack.c.bf16 %v455_v44, %v452_v38  ;;  %v540_v44 = vld [vmem:[%s3861_s1 + $0x2c] sm:$0xf] }
  0xda   : > { %v476_v39 = vpop.xlane.xlu0 %475  ;;  %v479_v46 = vpop.xlane.xlu1 %478 }
  0xdb   : > { %384 = vxpose.xlu0.b32.cont [12/16] (narrow) %v360_v26, 8  ;;  %v497_v59 = vpack.c.bf16 %v479_v46, %v476_v39  ;;  %v537_v26 = vld [vmem:[%s3861_s1 + $0x20] sm:$0xf] }
  0xde   : > { %v458_v41 = vpop.xlane.xlu0 %457  ;;  %v461_v48 = vpop.xlane.xlu1 %460 }
  0xdf   : > { %385 = vxpose.xlu0.b32.cont [13/16] (narrow) %v363_v30, 8  ;;  %v494_v60 = vpack.c.bf16 %v461_v48, %v458_v41  ;;  %v538_v30 = vld [vmem:[%s3861_s1 + $0x24] sm:$0xf] }
  0xe2   : > { %v482_v43 = vpop.xlane.xlu0 %481  ;;  %v485_v50 = vpop.xlane.xlu1 %484 }
  0xe3   : > { %386 = vxpose.xlu0.b32.cont [14/16] (narrow) %v366_v31, 8  ;;  %v498_v2 = vpack.c.bf16 %v485_v50, %v482_v43  ;;  %v539_v43 = vld [vmem:[%s3861_s1 + $0x28] sm:$0xf]  ;;  %v533_v50 = vld [vmem:[%s3861_s1 + $0x10] sm:$0xf] }
  0xe6   : > { %v464_v45 = vpop.xlane.xlu0 %463  ;;  %v467_v52 = vpop.xlane.xlu1 %466 }
  0xe7   : > { %387 = vxpose.xlu0.b32.cont [15/16] (narrow) %v369_v32, 8  ;;  %v495_v6 = vpack.c.bf16 %v467_v52, %v464_v45 }
  0xea   : > { %v488_v47 = vpop.xlane.xlu0 %487  ;;  %v491_v61 = vpop.xlane.xlu1 %490 }
  0xeb   : > { %388 = vxpose.xlu0.b32.end [16/16] (narrow) %v372_v35, 8  ;;  %v499_v12 = vpack.c.bf16 %v491_v61, %v488_v47 }
 0x12b   : > { %v389_v49 = vpop.trf.xlu0 }
 0x12c   : > { %405 = vst [vmem:[#allocation5] sm:$0x1] %v389_v49 }
 0x133   : > { %v500_v51 = vld [vmem:[#allocation5] sm:$0x1] }
 0x134   : > { %v501_v53 = vpack.c.bf16 %v500_v51, %v500_v51 }
 0x136   : > { %v503_v54 = vpack.i.b16 %v501_v53, %v501_v53 }
 0x138   : > { %v508_v58 = vrot.slane %v503_v54, %v306_v23  ;;  %v529_v23 = vld [vmem:[%s3861_s1] sm:$0xf] }
 0x13a   : > { %v509_v62 = vadd.bf16 %v508_v58, %v492_v55  ;;  %v513_v63 = vadd.bf16 %v508_v58, %v496_v56  ;;  %v510_v0 = vadd.bf16 %v508_v58, %v493_v57  ;;  %v514_v5 = vadd.bf16 %v508_v58, %v497_v59  ;;  %v534_v55 = vld [vmem:[%s3861_s1 + $0x14] sm:$0xf] }
 0x13b   : > { %v511_v11 = vadd.bf16 %v508_v58, %v494_v60  ;;  %v515_v13 = vadd.bf16 %v508_v58, %v498_v2  ;;  %v512_v17 = vadd.bf16 %v508_v58, %v495_v6  ;;  %v516_v18 = vadd.bf16 %v508_v58, %v499_v12 }
 0x13c   : > { %2799 = vtanh.bf16 %v509_v62  ;;  %v541_v62 = vld [vmem:[%s3861_s1 + $0x30] sm:$0xf] }
 0x13d   : > { %2801 = vtanh.bf16 %v513_v63  ;;  %v542_v63 = vld [vmem:[%s3861_s1 + $0x34] sm:$0xf] }
 0x13e   : > { %2803 = vtanh.bf16 %v510_v0 }
 0x13f   : > { %2805 = vtanh.bf16 %v514_v5 }
 0x140   : > { %2807 = vtanh.bf16 %v511_v11 }
 0x141   : > { %2809 = vtanh.bf16 %v515_v13 }
 0x142   : > { %2811 = vtanh.bf16 %v512_v17  ;;  %v535_v17 = vld [vmem:[%s3861_s1 + $0x18] sm:$0xf] }
 0x143   : > { %2813 = vtanh.bf16 %v516_v18  ;;  %v536_v18 = vld [vmem:[%s3861_s1 + $0x1c] sm:$0xf] }
 0x14a   : > { %v2800_v10 = vpop.eup %2799 }
 0x14b   : > { %v2802_v4 = vpop.eup %2801  ;;  %v2367_v24 = vcombine.low %v2800_v10, %v2800_v10  ;;  %v2368_v25 = vcombine.high %v2800_v10, %v2800_v10 }
 0x14c   : > { %v2804_v31 = vpop.eup %2803  ;;  %v2375_v32 = vcombine.low %v2802_v4, %v2802_v4  ;;  %v2376_v35 = vcombine.high %v2802_v4, %v2802_v4 }
 0x14d   : > { %v2806_v38 = vpop.eup %2805  ;;  %v601_v39 = vmul.bf16 %v2367_v24, %v529_v23  ;;  %v602_v40 = vmul.bf16 %v2368_v25, %v530_v19  ;;  %v2369_v41 = vcombine.low %v2804_v31, %v2804_v31  ;;  %v2370_v42 = vcombine.high %v2804_v31, %v2804_v31  ;;  %v543_v24 = vld [vmem:[%s3861_s1 + $0x38] sm:$0xf]  ;;  %v544_v25 = vld [vmem:[%s3861_s1 + $0x3c] sm:$0xf] }
 0x14e   : > { %v2808_v45 = vpop.eup %2807  ;;  %v609_v46 = vmul.bf16 %v2375_v32, %v537_v26  ;;  %v610_v47 = vmul.bf16 %v2376_v35, %v538_v30  ;;  %v2377_v48 = vcombine.low %v2806_v38, %v2806_v38  ;;  %v2378_v49 = vcombine.high %v2806_v38, %v2806_v38 }
 0x14f   : > { %v2810_v51 = vpop.eup %2809  ;;  %v2383_v52 = vcombine.low %v601_v39, %v602_v40  ;;  %v603_v53 = vmul.bf16 %v2369_v41, %v531_v36  ;;  %v604_v54 = vmul.bf16 %v2370_v42, %v532_v37  ;;  %v2371_v56 = vcombine.low %v2808_v45, %v2808_v45 }
 0x150   : > { %v2812_v57 = vpop.eup %2811  ;;  %v2387_v58 = vcombine.low %v609_v46, %v610_v47  ;;  %v611_v59 = vmul.bf16 %v2377_v48, %v539_v43  ;;  %v612_v60 = vmul.bf16 %v2378_v49, %v540_v44  ;;  %v2372_v61 = vcombine.high %v2808_v45, %v2808_v45 }
 0x151   : > { %v2814_v0 = vpop.eup %2813  ;;  %2625 = vmatprep.mubr.bf16.mxu0 %v2383_v52  ;;  %v2384_v2 = vcombine.low %v603_v53, %v604_v54  ;;  %v605_v5 = vmul.bf16 %v2371_v56, %v533_v50  ;;  %v2379_v6 = vcombine.low %v2810_v51, %v2810_v51  ;;  %v2380_v11 = vcombine.high %v2810_v51, %v2810_v51 }
 0x152   : > { %2633 = vmatprep.mubr.bf16.mxu1 %v2387_v58  ;;  %v2388_v12 = vcombine.low %v611_v59, %v612_v60  ;;  %v606_v13 = vmul.bf16 %v2372_v61, %v534_v55  ;;  %v2373_v10 = vcombine.low %v2812_v57, %v2812_v57  ;;  %v2374_v23 = vcombine.high %v2812_v57, %v2812_v57 }
 0x153   : > { %2626 = vmatmul.mubr.bf16.vlgmr.msra.gmra.mxu0 %v2384_v2  ;;  %v613_v19 = vmul.bf16 %v2379_v6, %v541_v62  ;;  %v614_v4 = vmul.bf16 %v2380_v11, %v542_v63  ;;  %v2381_v26 = vcombine.low %v2814_v0, %v2814_v0  ;;  %v2382_v30 = vcombine.high %v2814_v0, %v2814_v0 }
 0x154   : > { %2634 = vmatmul.mubr.bf16.vlgmr.msra.gmra.mxu1 %v2388_v12  ;;  %v2385_v31 = vcombine.low %v605_v5, %v606_v13  ;;  %v607_v35 = vmul.bf16 %v2373_v10, %v535_v17  ;;  %v608_v36 = vmul.bf16 %v2374_v23, %v536_v18  ;;  %v635_v41 = vmul.f32 0.1, %v2989_v7 }
 0x155   : > { %v2389_v32 = vcombine.low %v613_v19, %v614_v4  ;;  %v615_v37 = vmul.bf16 %v2381_v26, %v543_v24  ;;  %v616_v38 = vmul.bf16 %v2382_v30, %v544_v25  ;;  %v643_v42 = vmul.f32 0.1, %v3045_v22 }
 0x156   : > { %2629 = vmatprep.mubr.bf16.mxu0 %v2385_v31  ;;  %v2386_v39 = vcombine.low %v607_v35, %v608_v36  ;;  %v633_v43 = vmul.f32 0.1, %v2970_v1  ;;  %v641_v45 = vmul.f32 0.1, %v3035_v20  ;;  %v636_v48 = vmul.f32 0.1, %v2994_v8 }
 0x157   : > { %2637 = vmatprep.mubr.bf16.mxu1 %v2389_v32  ;;  %v2390_v40 = vcombine.low %v615_v37, %v616_v38  ;;  %v644_v51 = vmul.f32 0.1, %v3060_v27  ;;  %v634_v7 = vmul.f32 0.1, %v2975_v3  ;;  %v642_v20 = vmul.f32 0.1, %v3040_v21 }
 0x158   : > { %v639_v55 = vmul.f32 0.1, %v3017_v15  ;;  %v647_v57 = vmul.f32 0.1, %v3084_v33  ;;  %v637_v59 = vmul.f32 0.1, %v2999_v9 }
 0x159   : > { %v645_v61 = vmul.f32 0.1, %v3065_v28  ;;  %v640_v63 = vmul.f32 0.1, %v3022_v16  ;;  %v648_v2 = vmul.f32 0.1, %v3089_v34 }
 0x15a   : > { %v638_v6 = vmul.f32 0.1, %v3012_v14  ;;  %v646_v12 = vmul.f32 0.1, %v3070_v29 }
 0x15b   : > { %2630 = vmatmul.mubr.bf16.gmra.mxu0 %v2386_v39 }
 0x15c   : > { %2638 = vmatmul.mubr.bf16.gmra.mxu1 %v2390_v40 }
 0x213   : > { %v2627_v44 = vpop.f32.mrf.mxu0 }
 0x214   : > { %v788_v46 = vadd.f32 %v2627_v44, %v635_v41  ;;  %v2635_v47 = vpop.f32.mrf.mxu1 }
 0x215   : > { %v820_v49 = vadd.f32 %v2635_v47, %v643_v42  ;;  %v779_v50 = vpop.f32.mrf.mxu0 }
 0x216   : > { %845 = vst.msk [vmem:[#allocation3 + $0x10] sm:$0xff] %vm324_vm2, %v788_v46  ;;  %v780_v52 = vadd.f32 %v779_v50, %v633_v43  ;;  %v811_v53 = vpop.f32.mrf.mxu1 }
 0x217   : > { %853 = vst.msk [vmem:[#allocation3 + $0x50] sm:$0xff] %vm324_vm2, %v820_v49  ;;  %v812_v1 = vadd.f32 %v811_v53, %v641_v45  ;;  %v2628_v22 = vpop.f32.mrf.mxu0 }
 0x218   : > { %843 = vst.msk [vmem:[#allocation3] sm:$0xff] %vm324_vm2, %v780_v52  ;;  %v791_v54 = vadd.f32 %v2628_v22, %v636_v48  ;;  %v2636_v8 = vpop.f32.mrf.mxu1 }
 0x219   : > { %851 = vst.msk [vmem:[#allocation3 + $0x40] sm:$0xff] %vm324_vm2, %v812_v1  ;;  %v823_v27 = vadd.f32 %v2636_v8, %v644_v51  ;;  %v782_v56 = vpop.f32.mrf.mxu0 }
 0x21a   : > { %846 = vst.msk [vmem:[#allocation3 + $0x18] sm:$0xff] %vm324_vm2, %v791_v54  ;;  %v783_v3 = vadd.f32 %v782_v56, %v634_v7  ;;  %v814_v58 = vpop.f32.mrf.mxu1 }
 0x21b   : > { %854 = vst.msk [vmem:[#allocation3 + $0x58] sm:$0xff] %vm324_vm2, %v823_v27  ;;  %v815_v21 = vadd.f32 %v814_v58, %v642_v20  ;;  %v2631_v60 = vpop.f32.mrf.mxu0 }
 0x21c   : > { %844 = vst.msk [vmem:[#allocation3 + $0x8] sm:$0xff] %vm324_vm2, %v783_v3  ;;  %v804_v15 = vadd.f32 %v2631_v60, %v639_v55  ;;  %v2639_v62 = vpop.f32.mrf.mxu1 }
 0x21d   : > { %852 = vst.msk [vmem:[#allocation3 + $0x48] sm:$0xff] %vm324_vm2, %v815_v21  ;;  %v836_v33 = vadd.f32 %v2639_v62, %v647_v57  ;;  %v795_v0 = vpop.f32.mrf.mxu0 }
 0x21e   : > { %849 = vst.msk [vmem:[#allocation3 + $0x30] sm:$0xff] %vm324_vm2, %v804_v15  ;;  %v796_v9 = vadd.f32 %v795_v0, %v637_v59  ;;  %v827_v5 = vpop.f32.mrf.mxu1 }
 0x21f   : > { %857 = vst.msk [vmem:[#allocation3 + $0x70] sm:$0xff] %vm324_vm2, %v836_v33  ;;  %v828_v28 = vadd.f32 %v827_v5, %v645_v61  ;;  %v2632_v11 = vpop.f32.mrf.mxu0 }
 0x220   : > { %847 = vst.msk [vmem:[#allocation3 + $0x20] sm:$0xff] %vm324_vm2, %v796_v9  ;;  %v807_v16 = vadd.f32 %v2632_v11, %v640_v63  ;;  %v2640_v13 = vpop.f32.mrf.mxu1 }
 0x221   : > { %855 = vst.msk [vmem:[#allocation3 + $0x60] sm:$0xff] %vm324_vm2, %v828_v28  ;;  %v839_v17 = vadd.f32 %v2640_v13, %v648_v2  ;;  %v798_v34 = vpop.f32.mrf.mxu0 }
 0x222   : > { %850 = vst.msk [vmem:[#allocation3 + $0x38] sm:$0xff] %vm324_vm2, %v807_v16  ;;  %v799_v18 = vadd.f32 %v798_v34, %v638_v6  ;;  %v830_v10 = vpop.f32.mrf.mxu1 }
 0x223   : > { %858 = vst.msk [vmem:[#allocation3 + $0x78] sm:$0xff] %vm324_vm2, %v839_v17  ;;  %v831_v14 = vadd.f32 %v830_v10, %v646_v12 }
 0x224   : > { %848 = vst.msk [vmem:[#allocation3 + $0x28] sm:$0xff] %vm324_vm2, %v799_v18 }
 0x225   : > { %856 = vst.msk [vmem:[#allocation3 + $0x68] sm:$0xff] %vm324_vm2, %v831_v14 }
 0x226 PF: > { %p2399_p6 = scmp.ne.s32.totalorder %s2905_s15, 1 }
 0x228   : > { %862 = sbr.rel (%p2399_p6) target bundleno = 1082 (0x43a), region = 52 }
 0x22d   : > { %v3255_v29 = vld [vmem:[#allocation3] sm:$0xff]  ;;  %v965_v23 = vlaneseq  ;;  %v3257_v19 = vld [vmem:[#allocation3 + $0x8] sm:$0xff]  ;;  %vm948_vm3 = vcmask 257024   ;;  %v3268_v26 = vld [vmem:[#allocation3 + $0x10] sm:$0xff]  ;;  %vm985_vm4 = vcmask 261120  }
 0x22e   : > { %v3262_v4 = vld [vmem:[%s3862_s2 + $0x2] sm:$0x3]  ;;  %v2520_v24 = vpack.c.bf16 %v3255_v29, %v3255_v29  ;;  %v2521_v25 = vpack.c.bf16 %v3257_v19, %v3257_v19  ;;  %v3270_v30 = vld [vmem:[#allocation3 + $0x18] sm:$0xff]  ;;  %v2522_v35 = vpack.c.bf16 %v3268_v26, %v3268_v26  ;;  %v3282_v38 = vld [vmem:[#allocation3 + $0x28] sm:$0xff] }
 0x22f   : > { %v3272_v31 = vld [vmem:[#allocation3 + $0x20] sm:$0xff]  ;;  %v3274_v32 = vshrl.u32 %v965_v23, 7  ;;  %v2523_v36 = vpack.c.bf16 %v3270_v30, %v3270_v30  ;;  %v3284_v39 = vld [vmem:[#allocation3 + $0x30] sm:$0xff]  ;;  %v3286_v40 = vld [vmem:[#allocation3 + $0x38] sm:$0xff]  ;;  %v2525_v41 = vpack.c.bf16 %v3282_v38, %v3282_v38 }
 0x230   : > { %v2524_v37 = vpack.c.bf16 %v3272_v31, %v3272_v31  ;;  %949 = vst.msk [vmem:[#allocation4] sm:$0xf] %vm948_vm3, %v2520_v24  ;;  %950 = vst.msk [vmem:[#allocation4 + $0x4] sm:$0xf] %vm948_vm3, %v2521_v25  ;;  %v2526_v42 = vpack.c.bf16 %v3284_v39, %v3284_v39  ;;  %v2527_v43 = vpack.c.bf16 %v3286_v40, %v3286_v40  ;;  %v3296_v44 = vld [vmem:[#allocation3 + $0x40] sm:$0xff]  ;;  %v3298_v45 = vld [vmem:[#allocation3 + $0x48] sm:$0xff] }
 0x231   : > { %v3300_v46 = vld [vmem:[#allocation3 + $0x50] sm:$0xff]  ;;  %v967_v47 = vsub.s32 0, %v3274_v32  ;;  %951 = vst.msk [vmem:[#allocation4 + $0x8] sm:$0xf] %vm948_vm3, %v2522_v35  ;;  %952 = vst.msk [vmem:[#allocation4 + $0xc] sm:$0xf] %vm948_vm3, %v2523_v36  ;;  %v2528_v48 = vpack.c.bf16 %v3296_v44, %v3296_v44  ;;  %v2529_v49 = vpack.c.bf16 %v3298_v45, %v3298_v45 }
 0x232   : > { %953 = vst.msk [vmem:[#allocation4 + $0x10] sm:$0xf] %vm948_vm3, %v2524_v37  ;;  %v2530_v50 = vpack.c.bf16 %v3300_v46, %v3300_v46  ;;  %v3312_v51 = vld [vmem:[#allocation3 + $0x58] sm:$0xff]  ;;  %v3314_v52 = vld [vmem:[#allocation3 + $0x60] sm:$0xff]  ;;  %v3316_v53 = vld [vmem:[#allocation3 + $0x68] sm:$0xff]  ;;  %v1086_v17 = vsub.s32 1, %v3274_v32 }
 0x233   : > { %954 = vst.msk [vmem:[#allocation4 + $0x14] sm:$0xf] %vm948_vm3, %v2525_v41  ;;  %955 = vst.msk [vmem:[#allocation4 + $0x18] sm:$0xf] %vm948_vm3, %v2526_v42  ;;  %v2531_v7 = vpack.c.bf16 %v3312_v51, %v3312_v51  ;;  %v2532_v1 = vpack.c.bf16 %v3314_v52, %v3314_v52  ;;  %v2533_v22 = vpack.c.bf16 %v3316_v53, %v3316_v53  ;;  %v3327_v20 = vld [vmem:[#allocation3 + $0x70] sm:$0xff]  ;;  %v3329_v54 = vld [vmem:[#allocation3 + $0x78] sm:$0xff] }
 0x234   : > { %956 = vst.msk [vmem:[#allocation4 + $0x1c] sm:$0xf] %vm948_vm3, %v2527_v43  ;;  %v968_v8 = vrot.slane %v3262_v4, %v967_v47  ;;  %957 = vst.msk [vmem:[#allocation4 + $0x20] sm:$0xf] %vm948_vm3, %v2528_v48  ;;  %v2534_v55 = vpack.c.bf16 %v3327_v20, %v3327_v20  ;;  %v2535_v27 = vpack.c.bf16 %v3329_v54, %v3329_v54 }
 0x235   : > { %958 = vst.msk [vmem:[#allocation4 + $0x24] sm:$0xf] %vm948_vm3, %v2529_v49  ;;  %959 = vst.msk [vmem:[#allocation4 + $0x28] sm:$0xf] %vm948_vm3, %v2530_v50  ;;  %v1087_v23 = vrot.slane %v3262_v4, %v1086_v17 }
 0x236   : > { %960 = vst.msk [vmem:[#allocation4 + $0x2c] sm:$0xf] %vm948_vm3, %v2531_v7  ;;  %961 = vst.msk [vmem:[#allocation4 + $0x30] sm:$0xf] %vm948_vm3, %v2532_v1  ;;  %v969_v56 = vmul.f32 %v968_v8, %v3255_v29  ;;  %v970_v57 = vmul.f32 %v968_v8, %v3257_v19  ;;  %v971_v3 = vmul.f32 %v968_v8, %v3268_v26 }
 0x237   : > { %962 = vst.msk [vmem:[#allocation4 + $0x34] sm:$0xf] %vm948_vm3, %v2533_v22  ;;  %v972_v58 = vmul.f32 %v968_v8, %v3270_v30  ;;  %963 = vst.msk [vmem:[#allocation4 + $0x38] sm:$0xf] %vm948_vm3, %v2534_v55  ;;  %v973_v15 = vmul.f32 %v968_v8, %v3272_v31  ;;  %v974_v62 = vmul.f32 %v968_v8, %v3282_v38 }
 0x238   : > { %964 = vst.msk [vmem:[#allocation4 + $0x3c] sm:$0xf] %vm948_vm3, %v2535_v27  ;;  %v986_v59 = vsel %vm985_vm4, %v969_v56, 0.0  ;;  %v992_v21 = vsel %vm985_vm4, %v971_v3, 0.0  ;;  %v989_v60 = vsel %vm985_vm4, %v970_v57, 0.0  ;;  %v975_v0 = vmul.f32 %v968_v8, %v3284_v39 }
 0x239   : > { %987 = vadd.xlane.f32.xlu0 %v986_v59  ;;  %993 = vadd.xlane.f32.xlu1 %v992_v21  ;;  %v995_v61 = vsel %vm985_vm4, %v972_v58, 0.0  ;;  %v998_v63 = vsel %vm985_vm4, %v973_v15, 0.0  ;;  %v1001_v33 = vsel %vm985_vm4, %v974_v62, 0.0  ;;  %v976_v2 = vmul.f32 %v968_v8, %v3286_v40 }
 0x23a   : > { %v1004_v9 = vsel %vm985_vm4, %v975_v0, 0.0  ;;  %v977_v6 = vmul.f32 %v968_v8, %v3296_v44  ;;  %v978_v28 = vmul.f32 %v968_v8, %v3298_v45  ;;  %v979_v16 = vmul.f32 %v968_v8, %v3300_v46 }
 0x23b   : > { %v1007_v5 = vsel %vm985_vm4, %v976_v2, 0.0  ;;  %v980_v13 = vmul.f32 %v968_v8, %v3312_v51  ;;  %v981_v10 = vmul.f32 %v968_v8, %v3314_v52  ;;  %v982_v14 = vmul.f32 %v968_v8, %v3316_v53  ;;  %v2819_v2 = vld [vmem:[#allocation4 + $0x18] sm:$0xff]  }
 0x23c   : > { %v1010_v11 = vsel %vm985_vm4, %v977_v6, 0.0  ;;  %v1013_v12 = vsel %vm985_vm4, %v978_v28, 0.0  ;;  %v1016_v34 = vsel %vm985_vm4, %v979_v16, 0.0  ;;  %v983_v35 = vmul.f32 %v968_v8, %v3327_v20  ;;  %v2821_v28 = vld [vmem:[#allocation4 + $0x8] sm:$0xff]  }
 0x23d   : > { %990 = vadd.xlane.f32.xlu0 %v989_v60  ;;  %996 = vadd.xlane.f32.xlu1 %v995_v61  ;;  %v1019_v18 = vsel %vm985_vm4, %v980_v13, 0.0  ;;  %v1022_v24 = vsel %vm985_vm4, %v981_v10, 0.0  ;;  %v1025_v25 = vsel %vm985_vm4, %v982_v14, 0.0  ;;  %v984_v36 = vmul.f32 %v968_v8, %v3329_v54 }
 0x23e   : > { %v1028_v37 = vsel %vm985_vm4, %v983_v35, 0.0  ;;  %v1089_v42 = vmul.f32 %v1087_v23, %v3257_v19  ;;  %v1088_v43 = vmul.f32 %v1087_v23, %v3255_v29  ;;  %v1097_v49 = vmul.f32 %v1087_v23, %v3298_v45 }
 0x23f   : > { %v1031_v41 = vsel %vm985_vm4, %v984_v36, 0.0  ;;  %v1096_v50 = vmul.f32 %v1087_v23, %v3296_v44  ;;  %v1091_v19 = vmul.f32 %v1087_v23, %v3270_v30  ;;  %v1090_v29 = vmul.f32 %v1087_v23, %v3268_v26 }
 0x240   : > { %v1108_v4 = vsel %vm985_vm4, %v1089_v42, 0.0  ;;  %v1105_v48 = vsel %vm985_vm4, %v1088_v43, 0.0  ;;  %v1132_v7 = vsel %vm985_vm4, %v1097_v49, 0.0  ;;  %v1099_v45 = vmul.f32 %v1087_v23, %v3312_v51 }
 0x241   : > { %999 = vadd.xlane.f32.xlu0 %v998_v63  ;;  %1002 = vadd.xlane.f32.xlu1 %v1001_v33  ;;  %v1129_v1 = vsel %vm985_vm4, %v1096_v50, 0.0  ;;  %v1114_v22 = vsel %vm985_vm4, %v1091_v19, 0.0  ;;  %v1111_v8 = vsel %vm985_vm4, %v1090_v29, 0.0  ;;  %v1098_v44 = vmul.f32 %v1087_v23, %v3300_v46  ;;  %v2817_v63 = vld [vmem:[#allocation4 + $0x28] sm:$0xff]   ;;  %v2818_v33 = vld [vmem:[#allocation4 + $0x20] sm:$0xff]  }
 0x242   : > { %v1138_v55 = vsel %vm985_vm4, %v1099_v45, 0.0  ;;  %v1093_v30 = vmul.f32 %v1087_v23, %v3282_v38  ;;  %v1092_v26 = vmul.f32 %v1087_v23, %v3272_v31  ;;  %v1101_v51 = vmul.f32 %v1087_v23, %v3316_v53 }
 0x243   : > { %v1135_v27 = vsel %vm985_vm4, %v1098_v44, 0.0  ;;  %v1100_v46 = vmul.f32 %v1087_v23, %v3314_v52  ;;  %v1095_v38 = vmul.f32 %v1087_v23, %v3286_v40  ;;  %v1094_v31 = vmul.f32 %v1087_v23, %v3284_v39  ;;  %v2815_v39 = vld [vmem:[#allocation4 + $0x38] sm:$0xff]  }
 0x244   : > { %v1120_v56 = vsel %vm985_vm4, %v1093_v30, 0.0  ;;  %v1117_v57 = vsel %vm985_vm4, %v1092_v26, 0.0  ;;  %v1144_v3 = vsel %vm985_vm4, %v1101_v51, 0.0  ;;  %v1103_v53 = vmul.f32 %v1087_v23, %v3329_v54  ;;  %2641 = vmatprep.subr.bf16.mxu0 %v2815_v39  ;;  %2741 = vmatprep.subr.bf16.mxu1 %v2815_v39  ;;  %v2816_v54 = vld [vmem:[#allocation4 + $0x30] sm:$0xff]  }
 0x245   : > { %1005 = vadd.xlane.f32.xlu0 %v1004_v9  ;;  %1008 = vadd.xlane.f32.xlu1 %v1007_v5  ;;  %v1141_v58 = vsel %vm985_vm4, %v1100_v46, 0.0  ;;  %v1126_v59 = vsel %vm985_vm4, %v1095_v38, 0.0  ;;  %v1123_v21 = vsel %vm985_vm4, %v1094_v31, 0.0  ;;  %v1102_v52 = vmul.f32 %v1087_v23, %v3327_v20  ;;  %v2820_v5 = vld [vmem:[#allocation4 + $0x10] sm:$0xff]  }
 0x246   : > { %v1150_v60 = vsel %vm985_vm4, %v1103_v53, 0.0  ;;  %2642 = vmatpush3.bf16.msra.mxu0 %v2815_v39  ;;  %2749 = vmatpush3.bf16.msra.mxu1 %v2815_v39 }
 0x247   : > { %v1147_v61 = vsel %vm985_vm4, %v1102_v52, 0.0  ;;  %2643 = vmatprep.subr.bf16.mxu0 %v2816_v54  ;;  %2742 = vmatprep.subr.bf16.mxu1 %v2816_v54 }
 0x249   : > { %1011 = vadd.xlane.f32.xlu0 %v1010_v11  ;;  %1014 = vadd.xlane.f32.xlu1 %v1013_v12  ;;  %v2822_v12 = vld [vmem:[#allocation4] sm:$0xff]  }
 0x24a   : > { %2644 = vmatpush3.bf16.msra.mxu0 %v2816_v54  ;;  %2750 = vmatpush3.bf16.msra.mxu1 %v2816_v54  ;;  %v1199_v54 = vld [vmem:[%s3861_s1 + $0x24] sm:$0xf] }
 0x24b   : > { %2645 = vmatprep.subr.bf16.mxu0 %v2817_v63  ;;  %2743 = vmatprep.subr.bf16.mxu1 %v2817_v63 }
 0x24d   : > { %1017 = vadd.xlane.f32.xlu0 %v1016_v34  ;;  %1020 = vadd.xlane.f32.xlu1 %v1019_v18 }
 0x24e   : > { %2646 = vmatpush3.bf16.msra.mxu0 %v2817_v63  ;;  %2751 = vmatpush3.bf16.msra.mxu1 %v2817_v63 }
 0x24f   : > { %2647 = vmatprep.subr.bf16.mxu0 %v2818_v33  ;;  %2744 = vmatprep.subr.bf16.mxu1 %v2818_v33 }
 0x251   : > { %1023 = vadd.xlane.f32.xlu0 %v1022_v24  ;;  %1026 = vadd.xlane.f32.xlu1 %v1025_v25 }
 0x252   : > { %2648 = vmatpush3.bf16.msra.mxu0 %v2818_v33  ;;  %2752 = vmatpush3.bf16.msra.mxu1 %v2818_v33 }
 0x253   : > { %2649 = vmatprep.subr.bf16.mxu0 %v2819_v2  ;;  %2745 = vmatprep.subr.bf16.mxu1 %v2819_v2 }
 0x255   : > { %1029 = vadd.xlane.f32.xlu0 %v1028_v37  ;;  %1032 = vadd.xlane.f32.xlu1 %v1031_v41 }
 0x256   : > { %2650 = vmatpush3.bf16.msra.mxu0 %v2819_v2  ;;  %2753 = vmatpush3.bf16.msra.mxu1 %v2819_v2  ;;  %v1193_v2 = vld [vmem:[%s3861_s1 + $0xc] sm:$0xf] }
 0x257   : > { %2651 = vmatprep.subr.bf16.mxu0 %v2820_v5  ;;  %2746 = vmatprep.subr.bf16.mxu1 %v2820_v5 }
 0x259   : > { %1109 = vadd.xlane.f32.xlu1 %v1108_v4  ;;  %1106 = vadd.xlane.f32.xlu0 %v1105_v48 }
 0x25a   : > { %2652 = vmatpush3.bf16.msra.mxu0 %v2820_v5  ;;  %2754 = vmatpush3.bf16.msra.mxu1 %v2820_v5 }
 0x25b   : > { %2653 = vmatprep.subr.bf16.mxu0 %v2821_v28  ;;  %2747 = vmatprep.subr.bf16.mxu1 %v2821_v28 }
 0x25d   : > { %1133 = vadd.xlane.f32.xlu1 %v1132_v7  ;;  %1130 = vadd.xlane.f32.xlu0 %v1129_v1 }
 0x25e   : > { %2654 = vmatpush3.bf16.msra.mxu0 %v2821_v28  ;;  %2755 = vmatpush3.bf16.msra.mxu1 %v2821_v28 }
 0x25f   : > { %2655 = vmatprep.subr.bf16.mxu0 %v2822_v12  ;;  %2748 = vmatprep.subr.bf16.mxu1 %v2822_v12 }
 0x261   : > { %1115 = vadd.xlane.f32.xlu1 %v1114_v22  ;;  %1112 = vadd.xlane.f32.xlu0 %v1111_v8 }
 0x262   : > { %2656 = vmatpush3.bf16.msra.mxu0 %v2822_v12  ;;  %2756 = vmatpush3.bf16.msra.mxu1 %v2822_v12  ;;  %v1200_v12 = vld [vmem:[%s3861_s1 + $0x28] sm:$0xf] }
 0x265   : > { %1139 = vadd.xlane.f32.xlu1 %v1138_v55  ;;  %1136 = vadd.xlane.f32.xlu0 %v1135_v27 }
 0x269   : > { %1121 = vadd.xlane.f32.xlu1 %v1120_v56  ;;  %1118 = vadd.xlane.f32.xlu0 %v1117_v57 }
 0x26d   : > { %1145 = vadd.xlane.f32.xlu1 %v1144_v3  ;;  %1142 = vadd.xlane.f32.xlu0 %v1141_v58 }
 0x271   : > { %1127 = vadd.xlane.f32.xlu1 %v1126_v59  ;;  %1124 = vadd.xlane.f32.xlu0 %v1123_v21 }
 0x275   : > { %1151 = vadd.xlane.f32.xlu1 %v1150_v60  ;;  %1148 = vadd.xlane.f32.xlu0 %v1147_v61  ;;  %v1191_v61 = vld [vmem:[%s3861_s1 + $0x4] sm:$0xf] }
 0x2c2   : > { %v988_v40 = vpop.xlane.xlu0 %987  ;;  %v994_v62 = vpop.xlane.xlu1 %993 }
 0x2c3   : > { %1034 = vxpose.xlu0.b32.start [1/16] (narrow) %v988_v40, 8 }
 0x2c6   : > { %v991_v15 = vpop.xlane.xlu0 %990  ;;  %v997_v20 = vpop.xlane.xlu1 %996 }
 0x2c7   : > { %1035 = vxpose.xlu0.b32.cont [2/16] (narrow) %v991_v15, 8 }
 0x2ca   : > { %v1000_v0 = vpop.xlane.xlu0 %999  ;;  %v1003_v9 = vpop.xlane.xlu1 %1002 }
 0x2cb   : > { %1036 = vxpose.xlu0.b32.cont [3/16] (narrow) %v994_v62, 8  ;;  %v1198_v62 = vld [vmem:[%s3861_s1 + $0x20] sm:$0xf] }
 0x2ce   : > { %v1006_v6 = vpop.xlane.xlu0 %1005  ;;  %v1009_v11 = vpop.xlane.xlu1 %1008 }
 0x2cf   : > { %1037 = vxpose.xlu0.b32.cont [4/16] (narrow) %v997_v20, 8 }
 0x2d2   : > { %v1012_v16 = vpop.xlane.xlu0 %1011  ;;  %v1015_v13 = vpop.xlane.xlu1 %1014 }
 0x2d3   : > { %1038 = vxpose.xlu0.b32.cont [5/16] (narrow) %v1000_v0, 8  ;;  %v1192_v0 = vld [vmem:[%s3861_s1 + $0x8] sm:$0xf] }
 0x2d6   : > { %v1018_v17 = vpop.xlane.xlu0 %1017  ;;  %v1021_v34 = vpop.xlane.xlu1 %1020 }
 0x2d7   : > { %1039 = vxpose.xlu0.b32.cont [6/16] (narrow) %v1003_v9, 8 }
 0x2da   : > { %v1024_v18 = vpop.xlane.xlu0 %1023  ;;  %v1027_v10 = vpop.xlane.xlu1 %1026 }
 0x2db   : > { %1040 = vxpose.xlu0.b32.cont [7/16] (narrow) %v1006_v6, 8 }
 0x2de   : > { %v1030_v14 = vpop.xlane.xlu0 %1029  ;;  %v1033_v23 = vpop.xlane.xlu1 %1032 }
 0x2df   : > { %1041 = vxpose.xlu0.b32.cont [8/16] (narrow) %v1009_v11, 8 }
 0x2e2   : > { %v1107_v24 = vpop.xlane.xlu0 %1106  ;;  %v1110_v37 = vpop.xlane.xlu1 %1109 }
 0x2e3   : > { %1042 = vxpose.xlu0.b32.cont [9/16] (narrow) %v1012_v16, 8  ;;  %v1153_v44 = vpack.c.bf16 %v1110_v37, %v1107_v24  ;;  %v1201_v16 = vld [vmem:[%s3861_s1 + $0x2c] sm:$0xf] }
 0x2e6   : > { %v1131_v25 = vpop.xlane.xlu0 %1130  ;;  %v1134_v42 = vpop.xlane.xlu1 %1133 }
 0x2e7   : > { %1043 = vxpose.xlu0.b32.cont [10/16] (narrow) %v1015_v13, 8  ;;  %v1157_v55 = vpack.c.bf16 %v1134_v42, %v1131_v25 }
 0x2ea   : > { %v1113_v35 = vpop.xlane.xlu0 %1112  ;;  %v1116_v4 = vpop.xlane.xlu1 %1115 }
 0x2eb   : > { %1044 = vxpose.xlu0.b32.cont [11/16] (narrow) %v1018_v17, 8  ;;  %v1154_v27 = vpack.c.bf16 %v1116_v4, %v1113_v35 }
 0x2ee   : > { %v1137_v36 = vpop.xlane.xlu0 %1136  ;;  %v1140_v49 = vpop.xlane.xlu1 %1139 }
 0x2ef   : > { %1045 = vxpose.xlu0.b32.cont [12/16] (narrow) %v1021_v34, 8  ;;  %v1158_v26 = vpack.c.bf16 %v1140_v49, %v1137_v36  ;;  %v1195_v36 = vld [vmem:[%s3861_s1 + $0x14] sm:$0xf]  ;;  %v1202_v49 = vld [vmem:[%s3861_s1 + $0x30] sm:$0xf] }
 0x2f2   : > { %v1119_v41 = vpop.xlane.xlu0 %1118  ;;  %v1122_v7 = vpop.xlane.xlu1 %1121 }
 0x2f3   : > { %1046 = vxpose.xlu0.b32.cont [13/16] (narrow) %v1024_v18, 8  ;;  %v1155_v56 = vpack.c.bf16 %v1122_v7, %v1119_v41 }
 0x2f6   : > { %v1143_v43 = vpop.xlane.xlu0 %1142  ;;  %v1146_v19 = vpop.xlane.xlu1 %1145 }
 0x2f7   : > { %1047 = vxpose.xlu0.b32.cont [14/16] (narrow) %v1027_v10, 8  ;;  %v1159_v58 = vpack.c.bf16 %v1146_v19, %v1143_v43 }
 0x2fa   : > { %v1125_v48 = vpop.xlane.xlu0 %1124  ;;  %v1128_v22 = vpop.xlane.xlu1 %1127 }
 0x2fb   : > { %1048 = vxpose.xlu0.b32.cont [15/16] (narrow) %v1030_v14, 8  ;;  %v1156_v31 = vpack.c.bf16 %v1128_v22, %v1125_v48  ;;  %v1194_v14 = vld [vmem:[%s3861_s1 + $0x10] sm:$0xf] }
 0x2fe   : > { %v1149_v50 = vpop.xlane.xlu0 %1148  ;;  %v1152_v57 = vpop.xlane.xlu1 %1151 }
 0x2ff   : > { %1049 = vxpose.xlu0.b32.end [16/16] (narrow) %v1033_v23, 8  ;;  %v1160_v21 = vpack.c.bf16 %v1152_v57, %v1149_v50  ;;  %v1203_v50 = vld [vmem:[%s3861_s1 + $0x34] sm:$0xf]  ;;  %v1204_v57 = vld [vmem:[%s3861_s1 + $0x38] sm:$0xf] }
 0x33f   : > { %v1050_v1 = vpop.trf.xlu0 }
 0x340   : > { %1066 = vst [vmem:[#allocation5] sm:$0x1] %v1050_v1 }
 0x347   : > { %v1161_v29 = vld [vmem:[#allocation5] sm:$0x1] }
 0x348   : > { %v1162_v8 = vpack.c.bf16 %v1161_v29, %v1161_v29 }
 0x34a   : > { %v1164_v45 = vpack.i.b16 %v1162_v8, %v1162_v8 }
 0x34c   : > { %v1169_v30 = vrot.slane %v1164_v45, %v967_v47  ;;  %v1190_v47 = vld [vmem:[%s3861_s1] sm:$0xf] }
 0x34e   : > { %v1170_v51 = vadd.bf16 %v1169_v30, %v1153_v44  ;;  %v1174_v46 = vadd.bf16 %v1169_v30, %v1157_v55  ;;  %v1171_v3 = vadd.bf16 %v1169_v30, %v1154_v27  ;;  %v1175_v38 = vadd.bf16 %v1169_v30, %v1158_v26  ;;  %v1196_v44 = vld [vmem:[%s3861_s1 + $0x18] sm:$0xf]  ;;  %v1197_v55 = vld [vmem:[%s3861_s1 + $0x1c] sm:$0xf] }
 0x34f   : > { %v1172_v59 = vadd.bf16 %v1169_v30, %v1155_v56  ;;  %v1176_v53 = vadd.bf16 %v1169_v30, %v1159_v58  ;;  %v1173_v52 = vadd.bf16 %v1169_v30, %v1156_v31  ;;  %v1177_v60 = vadd.bf16 %v1169_v30, %v1160_v21 }
 0x350   : > { %2823 = vtanh.bf16 %v1170_v51  ;;  %v1205_v51 = vld [vmem:[%s3861_s1 + $0x3c] sm:$0xf] }
 0x351   : > { %2825 = vtanh.bf16 %v1174_v46 }
 0x352   : > { %2827 = vtanh.bf16 %v1171_v3 }
 0x353   : > { %2829 = vtanh.bf16 %v1175_v38 }
 0x354   : > { %2831 = vtanh.bf16 %v1172_v59 }
 0x355   : > { %2833 = vtanh.bf16 %v1176_v53 }
 0x356   : > { %2835 = vtanh.bf16 %v1173_v52 }
 0x357   : > { %2837 = vtanh.bf16 %v1177_v60 }
 0x35e   : > { %v2824_v32 = vpop.eup %2823 }
 0x35f   : > { %v2826_v40 = vpop.eup %2825  ;;  %v2417_v39 = vcombine.low %v2824_v32, %v2824_v32  ;;  %v2418_v15 = vcombine.high %v2824_v32, %v2824_v32  ;;  %v1297_v32 = vld [vmem:[%s3860_s0 + $0x10] sm:$0xff] }
 0x360   : > { %v2828_v20 = vpop.eup %2827  ;;  %v2425_v63 = vcombine.low %v2826_v40, %v2826_v40  ;;  %v2426_v33 = vcombine.high %v2826_v40, %v2826_v40  ;;  %v1313_v40 = vmul.f32 0.1, %v1297_v32 }
 0x361   : > { %v2830_v9 = vpop.eup %2829  ;;  %v1262_v5 = vmul.bf16 %v2417_v39, %v1190_v47  ;;  %v1263_v6 = vmul.bf16 %v2418_v15, %v1191_v61  ;;  %v2419_v28 = vcombine.low %v2828_v20, %v2828_v20  ;;  %v2420_v11 = vcombine.high %v2828_v20, %v2828_v20  ;;  %v1305_v47 = vld [vmem:[%s3860_s0 + $0x50] sm:$0xff]  ;;  %v1295_v61 = vld [vmem:[%s3860_s0] sm:$0xff]  ;;  %v1306_v20 = vld [vmem:[%s3860_s0 + $0x58] sm:$0xff] }
 0x362   : > { %v2832_v13 = vpop.eup %2831  ;;  %v1270_v17 = vmul.bf16 %v2425_v63, %v1198_v62  ;;  %v1271_v34 = vmul.bf16 %v2426_v33, %v1199_v54  ;;  %v2427_v18 = vcombine.low %v2830_v9, %v2830_v9  ;;  %v2428_v10 = vcombine.high %v2830_v9, %v2830_v9  ;;  %v1303_v39 = vld [vmem:[%s3860_s0 + $0x40] sm:$0xff]  ;;  %v1298_v62 = vld [vmem:[%s3860_s0 + $0x18] sm:$0xff] }
 0x363   : > { %v2834_v23 = vpop.eup %2833  ;;  %v2433_v24 = vcombine.low %v1262_v5, %v1263_v6  ;;  %v1264_v25 = vmul.bf16 %v2419_v28, %v1192_v0  ;;  %v1265_v35 = vmul.bf16 %v2420_v11, %v1193_v2  ;;  %v2421_v37 = vcombine.low %v2832_v13, %v2832_v13  ;;  %v1296_v0 = vld [vmem:[%s3860_s0 + $0x8] sm:$0xff] }
 0x364   : > { %v2836_v41 = vpop.eup %2835  ;;  %v2437_v42 = vcombine.low %v1270_v17, %v1271_v34  ;;  %v1272_v43 = vmul.bf16 %v2427_v18, %v1200_v12  ;;  %v1273_v4 = vmul.bf16 %v2428_v10, %v1201_v16  ;;  %v2422_v48 = vcombine.high %v2832_v13, %v2832_v13  ;;  %v1304_v6 = vld [vmem:[%s3860_s0 + $0x48] sm:$0xff]  ;;  %v1301_v16 = vld [vmem:[%s3860_s0 + $0x30] sm:$0xff] }
 0x365   : > { %v2838_v7 = vpop.eup %2837  ;;  %2657 = vmatprep.mubr.bf16.mxu0 %v2433_v24  ;;  %v2434_v1 = vcombine.low %v1264_v25, %v1265_v35  ;;  %v1266_v19 = vmul.bf16 %v2421_v37, %v1194_v14  ;;  %v2429_v29 = vcombine.low %v2834_v23, %v2834_v23  ;;  %v2430_v22 = vcombine.high %v2834_v23, %v2834_v23  ;;  %v1309_v18 = vld [vmem:[%s3860_s0 + $0x70] sm:$0xff]  ;;  %v1299_v24 = vld [vmem:[%s3860_s0 + $0x20] sm:$0xff] }
 0x366   : > { %2665 = vmatprep.mubr.bf16.mxu1 %v2437_v42  ;;  %v2438_v8 = vcombine.low %v1272_v43, %v1273_v4  ;;  %v1267_v45 = vmul.bf16 %v2422_v48, %v1195_v36  ;;  %v2423_v27 = vcombine.low %v2836_v41, %v2836_v41  ;;  %v2424_v30 = vcombine.high %v2836_v41, %v2836_v41  ;;  %v1307_v37 = vld [vmem:[%s3860_s0 + $0x60] sm:$0xff]  ;;  %v1302_v4 = vld [vmem:[%s3860_s0 + $0x38] sm:$0xff] }
 0x367   : > { %2658 = vmatmul.mubr.bf16.vlgmr.msra.gmra.mxu0 %v2434_v1  ;;  %v1274_v26 = vmul.bf16 %v2429_v29, %v1202_v49  ;;  %v1275_v56 = vmul.bf16 %v2430_v22, %v1203_v50  ;;  %v2431_v46 = vcombine.low %v2838_v7, %v2838_v7  ;;  %v2432_v3 = vcombine.high %v2838_v7, %v2838_v7  ;;  %v1310_v7 = vld [vmem:[%s3860_s0 + $0x78] sm:$0xff]  ;;  %v1300_v22 = vld [vmem:[%s3860_s0 + $0x28] sm:$0xff] }
 0x368   : > { %2666 = vmatmul.mubr.bf16.vlgmr.msra.gmra.mxu1 %v2438_v8  ;;  %v2435_v58 = vcombine.low %v1266_v19, %v1267_v45  ;;  %v1268_v31 = vmul.bf16 %v2423_v27, %v1196_v44  ;;  %v1269_v59 = vmul.bf16 %v2424_v30, %v1197_v55  ;;  %v1321_v15 = vmul.f32 0.1, %v1305_v47  ;;  %v1308_v55 = vld [vmem:[%s3860_s0 + $0x68] sm:$0xff] }
 0x369   : > { %v2439_v38 = vcombine.low %v1274_v26, %v1275_v56  ;;  %v1276_v21 = vmul.bf16 %v2431_v46, %v1204_v57  ;;  %v1277_v53 = vmul.bf16 %v2432_v3, %v1205_v51  ;;  %v1311_v54 = vmul.f32 0.1, %v1295_v61 }
 0x36a   : > { %2661 = vmatprep.mubr.bf16.mxu0 %v2435_v58  ;;  %v2436_v52 = vcombine.low %v1268_v31, %v1269_v59  ;;  %v1319_v33 = vmul.f32 0.1, %v1303_v39  ;;  %v1314_v5 = vmul.f32 0.1, %v1298_v62  ;;  %v1322_v12 = vmul.f32 0.1, %v1306_v20 }
 0x36b   : > { %2669 = vmatprep.mubr.bf16.mxu1 %v2439_v38  ;;  %v2440_v60 = vcombine.low %v1276_v21, %v1277_v53  ;;  %v1312_v34 = vmul.f32 0.1, %v1296_v0  ;;  %v1320_v23 = vmul.f32 0.1, %v1304_v6  ;;  %v1317_v36 = vmul.f32 0.1, %v1301_v16 }
 0x36c   : > { %v1325_v43 = vmul.f32 0.1, %v1309_v18  ;;  %v1315_v50 = vmul.f32 0.1, %v1299_v24  ;;  %v1323_v29 = vmul.f32 0.1, %v1307_v37 }
 0x36d   : > { %v1318_v44 = vmul.f32 0.1, %v1302_v4  ;;  %v1326_v26 = vmul.f32 0.1, %v1310_v7  ;;  %v1316_v51 = vmul.f32 0.1, %v1300_v22 }
 0x36e   : > { %v1324_v58 = vmul.f32 0.1, %v1308_v55 }
 0x36f   : > { %2662 = vmatmul.mubr.bf16.gmra.mxu0 %v2436_v52 }
 0x370   : > { %2670 = vmatmul.mubr.bf16.gmra.mxu1 %v2440_v60 }
 0x427   : > { %v2659_v63 = vpop.f32.mrf.mxu0 }
 0x428   : > { %v1466_v2 = vadd.f32 %v2659_v63, %v1313_v40  ;;  %v2667_v9 = vpop.f32.mrf.mxu1 }
 0x429   : > { %v1498_v28 = vadd.f32 %v2667_v9, %v1321_v15  ;;  %v1457_v11 = vpop.f32.mrf.mxu0 }
 0x42a   : > { %1523 = vst.msk [vmem:[#allocation2 + $0x10] sm:$0xff] %vm985_vm4, %v1466_v2  ;;  %v1458_v13 = vadd.f32 %v1457_v11, %v1311_v54  ;;  %v1489_v17 = vpop.f32.mrf.mxu1 }
 0x42b   : > { %1531 = vst.msk [vmem:[#allocation2 + $0x50] sm:$0xff] %vm985_vm4, %v1498_v28  ;;  %v1490_v10 = vadd.f32 %v1489_v17, %v1319_v33  ;;  %v2660_v14 = vpop.f32.mrf.mxu0 }
 0x42c   : > { %1521 = vst.msk [vmem:[#allocation2] sm:$0xff] %vm985_vm4, %v1458_v13  ;;  %v1469_v25 = vadd.f32 %v2660_v14, %v1314_v5  ;;  %v2668_v35 = vpop.f32.mrf.mxu1 }
 0x42d   : > { %1529 = vst.msk [vmem:[#allocation2 + $0x40] sm:$0xff] %vm985_vm4, %v1490_v10  ;;  %v1501_v41 = vadd.f32 %v2668_v35, %v1322_v12  ;;  %v1460_v42 = vpop.f32.mrf.mxu0 }
 0x42e   : > { %1524 = vst.msk [vmem:[#allocation2 + $0x18] sm:$0xff] %vm985_vm4, %v1469_v25  ;;  %v1461_v48 = vadd.f32 %v1460_v42, %v1312_v34  ;;  %v1492_v49 = vpop.f32.mrf.mxu1 }
 0x42f   : > { %1532 = vst.msk [vmem:[#allocation2 + $0x58] sm:$0xff] %vm985_vm4, %v1501_v41  ;;  %v1493_v1 = vadd.f32 %v1492_v49, %v1320_v23  ;;  %v2663_v19 = vpop.f32.mrf.mxu0 }
 0x430   : > { %1522 = vst.msk [vmem:[#allocation2 + $0x8] sm:$0xff] %vm985_vm4, %v1461_v48  ;;  %v1482_v8 = vadd.f32 %v2663_v19, %v1317_v36  ;;  %v2671_v45 = vpop.f32.mrf.mxu1 }
 0x431   : > { %1530 = vst.msk [vmem:[#allocation2 + $0x48] sm:$0xff] %vm985_vm4, %v1493_v1  ;;  %v1514_v27 = vadd.f32 %v2671_v45, %v1325_v43  ;;  %v1473_v30 = vpop.f32.mrf.mxu0 }
 0x432   : > { %1527 = vst.msk [vmem:[#allocation2 + $0x30] sm:$0xff] %vm985_vm4, %v1482_v8  ;;  %v1474_v56 = vadd.f32 %v1473_v30, %v1315_v50  ;;  %v1505_v57 = vpop.f32.mrf.mxu1 }
 0x433   : > { %1535 = vst.msk [vmem:[#allocation2 + $0x70] sm:$0xff] %vm985_vm4, %v1514_v27  ;;  %v1506_v46 = vadd.f32 %v1505_v57, %v1323_v29  ;;  %v2664_v3 = vpop.f32.mrf.mxu0 }
 0x434   : > { %1525 = vst.msk [vmem:[#allocation2 + $0x20] sm:$0xff] %vm985_vm4, %v1474_v56  ;;  %v1485_v38 = vadd.f32 %v2664_v3, %v1318_v44  ;;  %v2672_v31 = vpop.f32.mrf.mxu1 }
 0x435   : > { %1533 = vst.msk [vmem:[#allocation2 + $0x60] sm:$0xff] %vm985_vm4, %v1506_v46  ;;  %v1517_v59 = vadd.f32 %v2672_v31, %v1326_v26  ;;  %v1476_v21 = vpop.f32.mrf.mxu0 }
 0x436   : > { %1528 = vst.msk [vmem:[#allocation2 + $0x38] sm:$0xff] %vm985_vm4, %v1485_v38  ;;  %v1477_v53 = vadd.f32 %v1476_v21, %v1316_v51  ;;  %v1508_v52 = vpop.f32.mrf.mxu1 }
 0x437   : > { %1536 = vst.msk [vmem:[#allocation2 + $0x78] sm:$0xff] %vm985_vm4, %v1517_v59  ;;  %v1509_v60 = vadd.f32 %v1508_v52, %v1324_v58 }
 0x438   : > { %1526 = vst.msk [vmem:[#allocation2 + $0x28] sm:$0xff] %vm985_vm4, %v1477_v53 }
 0x439   : > { %1534 = vst.msk [vmem:[#allocation2 + $0x68] sm:$0xff] %vm985_vm4, %v1509_v60 }
 0x43a PF: > { %p2449_p7 = scmp.ne.s32.totalorder %s2905_s15, 2 }
 0x43c   : > { %1540 = sbr.rel (%p2449_p7) target bundleno = 1857 (0x741), region = 60 }
 0x441   : > { %v3527_v32 = vld [vmem:[#allocation2] sm:$0xff]  ;;  %v1643_v47 = vlaneseq  ;;  %v3529_v61 = vld [vmem:[#allocation2 + $0x8] sm:$0xff]  ;;  %vm1626_vm5 = vcmask 257024   ;;  %v3540_v62 = vld [vmem:[#allocation2 + $0x10] sm:$0xff]  ;;  %vm1663_vm6 = vcmask 261120   ;;  %vm2917_vm7 = vmmov 0  }
 0x442   : > { %v3534_v40 = vld [vmem:[%s3862_s2 + $0x4] sm:$0x3]  ;;  %v2536_v39 = vpack.c.bf16 %v3527_v32, %v3527_v32  ;;  %v2537_v15 = vpack.c.bf16 %v3529_v61, %v3529_v61  ;;  %v3542_v54 = vld [vmem:[#allocation2 + $0x18] sm:$0xff]  ;;  %v2538_v33 = vpack.c.bf16 %v3540_v62, %v3540_v62  ;;  %v3554_v9 = vld [vmem:[#allocation2 + $0x28] sm:$0xff]  ;;  %vm2266_vm8 = vcmask 254976  }
 0x443   : > { %v3544_v20 = vld [vmem:[#allocation2 + $0x20] sm:$0xff]  ;;  %v3546_v63 = vshrl.u32 %v1643_v47, 7  ;;  %v2539_v0 = vpack.c.bf16 %v3542_v54, %v3542_v54  ;;  %v3556_v5 = vld [vmem:[#allocation2 + $0x30] sm:$0xff]  ;;  %v3558_v6 = vld [vmem:[#allocation2 + $0x38] sm:$0xff]  ;;  %v2541_v28 = vpack.c.bf16 %v3554_v9, %v3554_v9 }
 0x444   : > { %v2540_v2 = vpack.c.bf16 %v3544_v20, %v3544_v20  ;;  %1627 = vst.msk [vmem:[#allocation4] sm:$0xf] %vm1626_vm5, %v2536_v39  ;;  %1628 = vst.msk [vmem:[#allocation4 + $0x4] sm:$0xf] %vm1626_vm5, %v2537_v15  ;;  %v2542_v11 = vpack.c.bf16 %v3556_v5, %v3556_v5  ;;  %v2543_v12 = vpack.c.bf16 %v3558_v6, %v3558_v6  ;;  %v3568_v16 = vld [vmem:[#allocation2 + $0x40] sm:$0xff]  ;;  %v3570_v13 = vld [vmem:[#allocation2 + $0x48] sm:$0xff] }
 0x445   : > { %v3572_v17 = vld [vmem:[#allocation2 + $0x50] sm:$0xff]  ;;  %v1645_v34 = vsub.s32 0, %v3546_v63  ;;  %1629 = vst.msk [vmem:[#allocation4 + $0x8] sm:$0xf] %vm1626_vm5, %v2538_v33  ;;  %1630 = vst.msk [vmem:[#allocation4 + $0xc] sm:$0xf] %vm1626_vm5, %v2539_v0  ;;  %v2544_v18 = vpack.c.bf16 %v3568_v16, %v3568_v16  ;;  %v2545_v10 = vpack.c.bf16 %v3570_v13, %v3570_v13 }
 0x446   : > { %1631 = vst.msk [vmem:[#allocation4 + $0x10] sm:$0xf] %vm1626_vm5, %v2540_v2  ;;  %v2546_v14 = vpack.c.bf16 %v3572_v17, %v3572_v17  ;;  %v3584_v23 = vld [vmem:[#allocation2 + $0x58] sm:$0xff]  ;;  %v3586_v24 = vld [vmem:[#allocation2 + $0x60] sm:$0xff]  ;;  %v3588_v25 = vld [vmem:[#allocation2 + $0x68] sm:$0xff]  ;;  %v1764_v59 = vsub.s32 1, %v3546_v63 }
 0x447   : > { %1632 = vst.msk [vmem:[#allocation4 + $0x14] sm:$0xf] %vm1626_vm5, %v2541_v28  ;;  %1633 = vst.msk [vmem:[#allocation4 + $0x18] sm:$0xf] %vm1626_vm5, %v2542_v11  ;;  %v2547_v35 = vpack.c.bf16 %v3584_v23, %v3584_v23  ;;  %v2548_v36 = vpack.c.bf16 %v3586_v24, %v3586_v24  ;;  %v2549_v37 = vpack.c.bf16 %v3588_v25, %v3588_v25  ;;  %v3599_v41 = vld [vmem:[#allocation2 + $0x70] sm:$0xff]  ;;  %v3601_v42 = vld [vmem:[#allocation2 + $0x78] sm:$0xff] }
 0x448   : > { %1634 = vst.msk [vmem:[#allocation4 + $0x1c] sm:$0xf] %vm1626_vm5, %v2543_v12  ;;  %v1646_v43 = vrot.slane %v3534_v40, %v1645_v34  ;;  %1635 = vst.msk [vmem:[#allocation4 + $0x20] sm:$0xf] %vm1626_vm5, %v2544_v18  ;;  %v2550_v4 = vpack.c.bf16 %v3599_v41, %v3599_v41  ;;  %v2551_v48 = vpack.c.bf16 %v3601_v42, %v3601_v42 }
 0x449   : > { %1636 = vst.msk [vmem:[#allocation4 + $0x24] sm:$0xf] %vm1626_vm5, %v2545_v10  ;;  %1637 = vst.msk [vmem:[#allocation4 + $0x28] sm:$0xf] %vm1626_vm5, %v2546_v14  ;;  %v1765_v47 = vrot.slane %v3534_v40, %v1764_v59 }
 0x44a   : > { %1638 = vst.msk [vmem:[#allocation4 + $0x2c] sm:$0xf] %vm1626_vm5, %v2547_v35  ;;  %1639 = vst.msk [vmem:[#allocation4 + $0x30] sm:$0xf] %vm1626_vm5, %v2548_v36  ;;  %v1647_v49 = vmul.f32 %v1646_v43, %v3527_v32  ;;  %v1648_v50 = vmul.f32 %v1646_v43, %v3529_v61  ;;  %v1649_v7 = vmul.f32 %v1646_v43, %v3540_v62 }
 0x44b   : > { %1640 = vst.msk [vmem:[#allocation4 + $0x34] sm:$0xf] %vm1626_vm5, %v2549_v37  ;;  %v1650_v1 = vmul.f32 %v1646_v43, %v3542_v54  ;;  %1641 = vst.msk [vmem:[#allocation4 + $0x38] sm:$0xf] %vm1626_vm5, %v2550_v4  ;;  %v1651_v45 = vmul.f32 %v1646_v43, %v3544_v20  ;;  %v1652_v44 = vmul.f32 %v1646_v43, %v3554_v9 }
 0x44c   : > { %1642 = vst.msk [vmem:[#allocation4 + $0x3c] sm:$0xf] %vm1626_vm5, %v2551_v48  ;;  %v1664_v19 = vsel %vm1663_vm6, %v1647_v49, 0.0  ;;  %v1670_v29 = vsel %vm1663_vm6, %v1649_v7, 0.0  ;;  %v1667_v22 = vsel %vm1663_vm6, %v1648_v50, 0.0  ;;  %v1653_v30 = vmul.f32 %v1646_v43, %v3556_v5 }
 0x44d   : > { %1665 = vadd.xlane.f32.xlu0 %v1664_v19  ;;  %1671 = vadd.xlane.f32.xlu1 %v1670_v29  ;;  %v1673_v8 = vsel %vm1663_vm6, %v1650_v1, 0.0  ;;  %v1676_v55 = vsel %vm1663_vm6, %v1651_v45, 0.0  ;;  %v1679_v27 = vsel %vm1663_vm6, %v1652_v44, 0.0  ;;  %v1654_v26 = vmul.f32 %v1646_v43, %v3558_v6 }
 0x44e   : > { %v1682_v56 = vsel %vm1663_vm6, %v1653_v30, 0.0  ;;  %v1655_v51 = vmul.f32 %v1646_v43, %v3568_v16  ;;  %v1656_v46 = vmul.f32 %v1646_v43, %v3570_v13  ;;  %v1657_v38 = vmul.f32 %v1646_v43, %v3572_v17 }
 0x44f   : > { %v1685_v57 = vsel %vm1663_vm6, %v1654_v26, 0.0  ;;  %v1658_v31 = vmul.f32 %v1646_v43, %v3584_v23  ;;  %v1659_v52 = vmul.f32 %v1646_v43, %v3586_v24  ;;  %v1660_v60 = vmul.f32 %v1646_v43, %v3588_v25  ;;  %v2843_v26 = vld [vmem:[#allocation4 + $0x18] sm:$0xff]  }
 0x450   : > { %v1688_v3 = vsel %vm1663_vm6, %v1655_v51, 0.0  ;;  %v1691_v58 = vsel %vm1663_vm6, %v1656_v46, 0.0  ;;  %v1694_v21 = vsel %vm1663_vm6, %v1657_v38, 0.0  ;;  %v1661_v33 = vmul.f32 %v1646_v43, %v3599_v41  ;;  %v2842_v30 = vld [vmem:[#allocation4 + $0x20] sm:$0xff]   ;;  %v2845_v46 = vld [vmem:[#allocation4 + $0x8] sm:$0xff]  }
 0x451   : > { %1668 = vadd.xlane.f32.xlu0 %v1667_v22  ;;  %1674 = vadd.xlane.f32.xlu1 %v1673_v8  ;;  %v1697_v53 = vsel %vm1663_vm6, %v1658_v31, 0.0  ;;  %v1700_v39 = vsel %vm1663_vm6, %v1659_v52, 0.0  ;;  %v1703_v15 = vsel %vm1663_vm6, %v1660_v60, 0.0  ;;  %v1662_v0 = vmul.f32 %v1646_v43, %v3601_v42 }
 0x452   : > { %v1706_v2 = vsel %vm1663_vm6, %v1661_v33, 0.0  ;;  %v1767_v11 = vmul.f32 %v1765_v47, %v3529_v61  ;;  %v1766_v12 = vmul.f32 %v1765_v47, %v3527_v32  ;;  %v1769_v10 = vmul.f32 %v1765_v47, %v3542_v54 }
 0x453   : > { %v1709_v28 = vsel %vm1663_vm6, %v1662_v0, 0.0  ;;  %v1768_v14 = vmul.f32 %v1765_v47, %v3540_v62  ;;  %v1771_v61 = vmul.f32 %v1765_v47, %v3554_v9  ;;  %v1770_v32 = vmul.f32 %v1765_v47, %v3544_v20 }
 0x454   : > { %v1786_v40 = vsel %vm1663_vm6, %v1767_v11, 0.0  ;;  %v1783_v18 = vsel %vm1663_vm6, %v1766_v12, 0.0  ;;  %v1792_v35 = vsel %vm1663_vm6, %v1769_v10, 0.0  ;;  %v1773_v54 = vmul.f32 %v1765_v47, %v3558_v6 }
 0x455   : > { %1677 = vadd.xlane.f32.xlu0 %v1676_v55  ;;  %1680 = vadd.xlane.f32.xlu1 %v1679_v27  ;;  %v1789_v36 = vsel %vm1663_vm6, %v1768_v14, 0.0  ;;  %v1798_v37 = vsel %vm1663_vm6, %v1771_v61, 0.0  ;;  %v1795_v43 = vsel %vm1663_vm6, %v1770_v32, 0.0  ;;  %v1772_v62 = vmul.f32 %v1765_v47, %v3556_v5  ;;  %v2840_v55 = vld [vmem:[#allocation4 + $0x30] sm:$0xff]   ;;  %v2841_v27 = vld [vmem:[#allocation4 + $0x28] sm:$0xff]  }
 0x456   : > { %v1804_v4 = vsel %vm1663_vm6, %v1773_v54, 0.0  ;;  %v1775_v9 = vmul.f32 %v1765_v47, %v3570_v13  ;;  %v1774_v20 = vmul.f32 %v1765_v47, %v3568_v16  ;;  %v1777_v6 = vmul.f32 %v1765_v47, %v3584_v23 }
 0x457   : > { %v1801_v48 = vsel %vm1663_vm6, %v1772_v62, 0.0  ;;  %v1776_v5 = vmul.f32 %v1765_v47, %v3572_v17  ;;  %v1779_v13 = vmul.f32 %v1765_v47, %v3588_v25  ;;  %v1778_v16 = vmul.f32 %v1765_v47, %v3586_v24  ;;  %v2839_v24 = vld [vmem:[#allocation4 + $0x38] sm:$0xff]  }
 0x458   : > { %v1810_v49 = vsel %vm1663_vm6, %v1775_v9, 0.0  ;;  %v1807_v50 = vsel %vm1663_vm6, %v1774_v20, 0.0  ;;  %v1816_v7 = vsel %vm1663_vm6, %v1777_v6, 0.0  ;;  %v1780_v23 = vmul.f32 %v1765_v47, %v3599_v41  ;;  %2673 = vmatprep.subr.bf16.mxu0 %v2839_v24 }
 0x459   : > { %1683 = vadd.xlane.f32.xlu0 %v1682_v56  ;;  %1686 = vadd.xlane.f32.xlu1 %v1685_v57  ;;  %v1813_v1 = vsel %vm1663_vm6, %v1776_v5, 0.0  ;;  %v1822_v19 = vsel %vm1663_vm6, %v1779_v13, 0.0  ;;  %v1819_v29 = vsel %vm1663_vm6, %v1778_v16, 0.0  ;;  %v1781_v22 = vmul.f32 %v1765_v47, %v3601_v42  ;;  %v2844_v57 = vld [vmem:[#allocation4 + $0x10] sm:$0xff]  }
 0x45a   : > { %v1825_v17 = vsel %vm1663_vm6, %v1780_v23, 0.0  ;;  %2674 = vmatpush3.bf16.msra.mxu0 %v2839_v24 }
 0x45b   : > { %v1828_v8 = vsel %vm1663_vm6, %v1781_v22, 0.0  ;;  %2675 = vmatprep.subr.bf16.mxu0 %v2840_v55  ;;  %v1869_v22 = vld [vmem:[%s3861_s1 + $0x4] sm:$0xf] }
 0x45d   : > { %1689 = vadd.xlane.f32.xlu0 %v1688_v3  ;;  %1692 = vadd.xlane.f32.xlu1 %v1691_v58  ;;  %v2846_v58 = vld [vmem:[#allocation4] sm:$0xff]  }
 0x45e   : > { %2676 = vmatpush3.bf16.msra.mxu0 %v2840_v55  ;;  %v1871_v55 = vld [vmem:[%s3861_s1 + $0xc] sm:$0xf] }
 0x45f   : > { %2677 = vmatprep.subr.bf16.mxu0 %v2841_v27 }
 0x461   : > { %1695 = vadd.xlane.f32.xlu0 %v1694_v21  ;;  %1698 = vadd.xlane.f32.xlu1 %v1697_v53 }
 0x462   : > { %2678 = vmatpush3.bf16.msra.mxu0 %v2841_v27 }
 0x463   : > { %2679 = vmatprep.subr.bf16.mxu0 %v2842_v30 }
 0x465   : > { %1701 = vadd.xlane.f32.xlu0 %v1700_v39  ;;  %1704 = vadd.xlane.f32.xlu1 %v1703_v15 }
 0x466   : > { %2680 = vmatpush3.bf16.msra.mxu0 %v2842_v30  ;;  %v1872_v30 = vld [vmem:[%s3861_s1 + $0x10] sm:$0xf] }
 0x467   : > { %2681 = vmatprep.subr.bf16.mxu0 %v2843_v26 }
 0x469   : > { %1707 = vadd.xlane.f32.xlu0 %v1706_v2  ;;  %1710 = vadd.xlane.f32.xlu1 %v1709_v28 }
 0x46a   : > { %2682 = vmatpush3.bf16.msra.mxu0 %v2843_v26  ;;  %v1873_v26 = vld [vmem:[%s3861_s1 + $0x14] sm:$0xf] }
 0x46b   : > { %2683 = vmatprep.subr.bf16.mxu0 %v2844_v57 }
 0x46d   : > { %1787 = vadd.xlane.f32.xlu1 %v1786_v40  ;;  %1784 = vadd.xlane.f32.xlu0 %v1783_v18 }
 0x46e   : > { %2684 = vmatpush3.bf16.msra.mxu0 %v2844_v57 }
 0x46f   : > { %2685 = vmatprep.subr.bf16.mxu0 %v2845_v46 }
 0x471   : > { %1793 = vadd.xlane.f32.xlu1 %v1792_v35  ;;  %1790 = vadd.xlane.f32.xlu0 %v1789_v36 }
 0x472   : > { %2686 = vmatpush3.bf16.msra.mxu0 %v2845_v46 }
 0x473   : > { %2687 = vmatprep.subr.bf16.mxu0 %v2846_v58 }
 0x475   : > { %1799 = vadd.xlane.f32.xlu1 %v1798_v37  ;;  %1796 = vadd.xlane.f32.xlu0 %v1795_v43 }
 0x476   : > { %2688 = vmatpush3.bf16.msra.mxu0 %v2846_v58 }
 0x479   : > { %1805 = vadd.xlane.f32.xlu1 %v1804_v4  ;;  %1802 = vadd.xlane.f32.xlu0 %v1801_v48 }
 0x47d   : > { %1811 = vadd.xlane.f32.xlu1 %v1810_v49  ;;  %1808 = vadd.xlane.f32.xlu0 %v1807_v50 }
 0x481   : > { %1817 = vadd.xlane.f32.xlu1 %v1816_v7  ;;  %1814 = vadd.xlane.f32.xlu0 %v1813_v1 }
 0x485   : > { %1823 = vadd.xlane.f32.xlu1 %v1822_v19  ;;  %1820 = vadd.xlane.f32.xlu0 %v1819_v29 }
 0x489   : > { %1826 = vadd.xlane.f32.xlu1 %v1825_v17  ;;  %v1868_v17 = vld [vmem:[%s3861_s1] sm:$0xf] }
 0x48d   : > { %1829 = vadd.xlane.f32.xlu1 %v1828_v8 }
 0x4d6   : > { %v1666_v25 = vpop.xlane.xlu0 %1665  ;;  %v1672_v44 = vpop.xlane.xlu1 %1671 }
 0x4d7   : > { %1712 = vxpose.xlu0.b32.start [1/16] (narrow) %v1666_v25, 8 }
 0x4da   : > { %v1669_v45 = vpop.xlane.xlu0 %1668  ;;  %v1675_v41 = vpop.xlane.xlu1 %1674 }
 0x4db   : > { %1713 = vxpose.xlu0.b32.cont [2/16] (narrow) %v1669_v45, 8 }
 0x4de   : > { %v1678_v42 = vpop.xlane.xlu0 %1677  ;;  %v1681_v56 = vpop.xlane.xlu1 %1680 }
 0x4df   : > { %1714 = vxpose.xlu0.b32.cont [3/16] (narrow) %v1672_v44, 8  ;;  %v1870_v44 = vld [vmem:[%s3861_s1 + $0x8] sm:$0xf] }
 0x4e2   : > { %v1684_v51 = vpop.xlane.xlu0 %1683  ;;  %v1687_v3 = vpop.xlane.xlu1 %1686 }
 0x4e3   : > { %1715 = vxpose.xlu0.b32.cont [4/16] (narrow) %v1675_v41, 8 }
 0x4e6   : > { %v1690_v38 = vpop.xlane.xlu0 %1689  ;;  %v1693_v31 = vpop.xlane.xlu1 %1692 }
 0x4e7   : > { %1716 = vxpose.xlu0.b32.cont [5/16] (narrow) %v1678_v42, 8 }
 0x4ea   : > { %v1696_v59 = vpop.xlane.xlu0 %1695  ;;  %v1699_v21 = vpop.xlane.xlu1 %1698 }
 0x4eb   : > { %1717 = vxpose.xlu0.b32.cont [6/16] (narrow) %v1681_v56, 8 }
 0x4ee   : > { %v1702_v53 = vpop.xlane.xlu0 %1701  ;;  %v1705_v52 = vpop.xlane.xlu1 %1704 }
 0x4ef   : > { %1718 = vxpose.xlu0.b32.cont [7/16] (narrow) %v1684_v51, 8 }
 0x4f2   : > { %v1708_v60 = vpop.xlane.xlu0 %1707  ;;  %v1711_v47 = vpop.xlane.xlu1 %1710 }
 0x4f3   : > { %1719 = vxpose.xlu0.b32.cont [8/16] (narrow) %v1687_v3, 8 }
 0x4f6   : > { %v1785_v39 = vpop.xlane.xlu0 %1784  ;;  %v1788_v2 = vpop.xlane.xlu1 %1787 }
 0x4f7   : > { %1720 = vxpose.xlu0.b32.cont [9/16] (narrow) %v1690_v38, 8  ;;  %v1831_v43 = vpack.c.bf16 %v1788_v2, %v1785_v39 }
 0x4fa   : > { %v1791_v15 = vpop.xlane.xlu0 %1790  ;;  %v1794_v11 = vpop.xlane.xlu1 %1793 }
 0x4fb   : > { %1721 = vxpose.xlu0.b32.cont [10/16] (narrow) %v1693_v31, 8  ;;  %v1832_v54 = vpack.c.bf16 %v1794_v11, %v1791_v15  ;;  %v1874_v15 = vld [vmem:[%s3861_s1 + $0x18] sm:$0xf]  ;;  %v1877_v11 = vld [vmem:[%s3861_s1 + $0x24] sm:$0xf] }
 0x4fe   : > { %v1797_v33 = vpop.xlane.xlu0 %1796  ;;  %v1800_v40 = vpop.xlane.xlu1 %1799 }
 0x4ff   : > { %1722 = vxpose.xlu0.b32.cont [11/16] (narrow) %v1696_v59, 8  ;;  %v1833_v4 = vpack.c.bf16 %v1800_v40, %v1797_v33  ;;  %v1875_v33 = vld [vmem:[%s3861_s1 + $0x1c] sm:$0xf] }
 0x502   : > { %v1803_v0 = vpop.xlane.xlu0 %1802  ;;  %v1806_v10 = vpop.xlane.xlu1 %1805 }
 0x503   : > { %1723 = vxpose.xlu0.b32.cont [12/16] (narrow) %v1699_v21, 8  ;;  %v1834_v48 = vpack.c.bf16 %v1806_v10, %v1803_v0 }
 0x506   : > { %v1809_v28 = vpop.xlane.xlu0 %1808  ;;  %v1812_v35 = vpop.xlane.xlu1 %1811 }
 0x507   : > { %1724 = vxpose.xlu0.b32.cont [13/16] (narrow) %v1702_v53, 8  ;;  %v1835_v49 = vpack.c.bf16 %v1812_v35, %v1809_v28  ;;  %v1876_v28 = vld [vmem:[%s3861_s1 + $0x20] sm:$0xf] }
 0x50a   : > { %v1815_v12 = vpop.xlane.xlu0 %1814  ;;  %v1818_v32 = vpop.xlane.xlu1 %1817 }
 0x50b   : > { %1725 = vxpose.xlu0.b32.cont [14/16] (narrow) %v1705_v52, 8  ;;  %v1836_v13 = vpack.c.bf16 %v1818_v32, %v1815_v12 }
 0x50e   : > { %v1821_v18 = vpop.xlane.xlu0 %1820  ;;  %v1824_v50 = vpop.xlane.xlu1 %1823 }
 0x50f   : > { %1726 = vxpose.xlu0.b32.cont [15/16] (narrow) %v1708_v60, 8  ;;  %v1837_v16 = vpack.c.bf16 %v1824_v50, %v1821_v18 }
 0x512   : > { %v1827_v1 = vpop.xlane.xlu1 %1826 }
 0x513   : > { %1727 = vxpose.xlu0.b32.end [16/16] (narrow) %v1711_v47, 8 }
 0x516   : > { %v1830_v63 = vpop.xlane.xlu1 %1829 }
 0x517   : > { %v1838_v29 = vpack.c.bf16 %v1830_v63, %v1827_v1  ;;  %v1883_v63 = vld [vmem:[%s3861_s1 + $0x3c] sm:$0xf] }
 0x553   : > { %v1728_v14 = vpop.trf.xlu0 }
 0x554   : > { %1744 = vst [vmem:[#allocation5] sm:$0x1] %v1728_v14 }
 0x55b   : > { %v1839_v36 = vld [vmem:[#allocation5] sm:$0x1] }
 0x55c   : > { %v1840_v61 = vpack.c.bf16 %v1839_v36, %v1839_v36 }
 0x55e   : > { %v1842_v37 = vpack.i.b16 %v1840_v61, %v1840_v61 }
 0x560   : > { %v1847_v62 = vrot.slane %v1842_v37, %v1645_v34 }
 0x562   : > { %v1848_v9 = vadd.bf16 %v1847_v62, %v1831_v43  ;;  %v1849_v20 = vadd.bf16 %v1847_v62, %v1832_v54  ;;  %v1850_v6 = vadd.bf16 %v1847_v62, %v1833_v4  ;;  %v1851_v5 = vadd.bf16 %v1847_v62, %v1834_v48  ;;  %v1878_v43 = vld [vmem:[%s3861_s1 + $0x28] sm:$0xf]  ;;  %v1879_v54 = vld [vmem:[%s3861_s1 + $0x2c] sm:$0xf]  ;;  %v1880_v48 = vld [vmem:[%s3861_s1 + $0x30] sm:$0xf] }
 0x563   : > { %v1852_v7 = vadd.bf16 %v1847_v62, %v1835_v49  ;;  %v1853_v19 = vadd.bf16 %v1847_v62, %v1836_v13  ;;  %v1854_v34 = vadd.bf16 %v1847_v62, %v1837_v16  ;;  %v1855_v25 = vadd.bf16 %v1847_v62, %v1838_v29 }
 0x564   : > { %2847 = vtanh.bf16 %v1848_v9  ;;  %v1881_v9 = vld [vmem:[%s3861_s1 + $0x34] sm:$0xf] }
 0x565   : > { %2849 = vtanh.bf16 %v1849_v20 }
 0x566   : > { %2851 = vtanh.bf16 %v1850_v6 }
 0x567   : > { %2853 = vtanh.bf16 %v1851_v5 }
 0x568   : > { %2855 = vtanh.bf16 %v1852_v7 }
 0x569   : > { %2857 = vtanh.bf16 %v1853_v19  ;;  %v1882_v19 = vld [vmem:[%s3861_s1 + $0x38] sm:$0xf] }
 0x56a   : > { %2859 = vtanh.bf16 %v1854_v34 }
 0x56b   : > { %2861 = vtanh.bf16 %v1855_v25 }
 0x572   : > { %v2848_v23 = vpop.eup %2847 }
 0x573   : > { %v2850_v8 = vpop.eup %2849  ;;  %v2467_v24 = vcombine.low %v2848_v23, %v2848_v23  ;;  %v2468_v45 = vcombine.high %v2848_v23, %v2848_v23 }
 0x574   : > { %v2852_v41 = vpop.eup %2851  ;;  %v2469_v27 = vcombine.low %v2850_v8, %v2850_v8  ;;  %v2470_v42 = vcombine.high %v2850_v8, %v2850_v8  ;;  %v1973_v8 = vld [vmem:[%s3860_s0] sm:$0xff] }
 0x575   : > { %v2854_v56 = vpop.eup %2853  ;;  %v1940_v57 = vmul.bf16 %v2467_v24, %v1868_v17  ;;  %v1941_v51 = vmul.bf16 %v2468_v45, %v1869_v22  ;;  %v2471_v46 = vcombine.low %v2852_v41, %v2852_v41  ;;  %v2472_v3 = vcombine.high %v2852_v41, %v2852_v41  ;;  %v1975_v22 = vld [vmem:[%s3860_s0 + $0x10] sm:$0xff]  ;;  %v1976_v24 = vld [vmem:[%s3860_s0 + $0x18] sm:$0xff] }
 0x576   : > { %v2856_v58 = vpop.eup %2855  ;;  %v1942_v38 = vmul.bf16 %v2469_v27, %v1870_v44  ;;  %v1943_v31 = vmul.bf16 %v2470_v42, %v1871_v55  ;;  %v2473_v60 = vcombine.low %v2854_v56, %v2854_v56  ;;  %v2474_v47 = vcombine.high %v2854_v56, %v2854_v56  ;;  %v1974_v55 = vld [vmem:[%s3860_s0 + $0x8] sm:$0xff] }
 0x577   : > { %v2483_v59 = vcombine.low %v1940_v57, %v1941_v51  ;;  %v1944_v21 = vmul.bf16 %v2471_v46, %v1872_v30  ;;  %v1945_v53 = vmul.bf16 %v2472_v3, %v1873_v26  ;;  %v2475_v0 = vcombine.low %v2856_v58, %v2856_v58  ;;  %v2858_v18 = vpop.eup %2857  ;;  %v1979_v30 = vld [vmem:[%s3860_s0 + $0x30] sm:$0xff]  ;;  %v1977_v51 = vld [vmem:[%s3860_s0 + $0x20] sm:$0xff] }
 0x578   : > { %v2484_v52 = vcombine.low %v1942_v38, %v1943_v31  ;;  %v2476_v2 = vcombine.high %v2856_v58, %v2856_v58  ;;  %v1946_v12 = vmul.bf16 %v2473_v60, %v1874_v15  ;;  %v1947_v40 = vmul.bf16 %v2474_v47, %v1875_v33  ;;  %v2860_v35 = vpop.eup %2859  ;;  %v1980_v38 = vld [vmem:[%s3860_s0 + $0x38] sm:$0xff] }
 0x579   : > { %2689 = vmatprep.mubr.bf16.mxu0 %v2483_v59  ;;  %v2485_v39 = vcombine.low %v1944_v21, %v1945_v53  ;;  %v1948_v10 = vmul.bf16 %v2475_v0, %v1876_v28  ;;  %v2477_v61 = vcombine.low %v2858_v18, %v2858_v18  ;;  %v2478_v32 = vcombine.high %v2858_v18, %v2858_v18  ;;  %v2862_v50 = vpop.eup %2861  ;;  %v1978_v53 = vld [vmem:[%s3860_s0 + $0x28] sm:$0xff] }
 0x57a   : > { %2690 = vmatmul.mubr.bf16.vlgmr.msra.gmra.mxu0 %v2484_v52  ;;  %v1949_v14 = vmul.bf16 %v2476_v2, %v1877_v11  ;;  %v2486_v36 = vcombine.low %v1946_v12, %v1947_v40  ;;  %v2479_v62 = vcombine.low %v2860_v35, %v2860_v35  ;;  %v2480_v4 = vcombine.high %v2860_v35, %v2860_v35  ;;  %v1981_v2 = vld [vmem:[%s3860_s0 + $0x40] sm:$0xff]  ;;  %v1984_v40 = vld [vmem:[%s3860_s0 + $0x58] sm:$0xff]  ;;  %v1982_v35 = vld [vmem:[%s3860_s0 + $0x48] sm:$0xff] }
 0x57b   : > { %2693 = vmatprep.mubr.bf16.mxu0 %v2485_v39  ;;  %v1950_v20 = vmul.bf16 %v2477_v61, %v1878_v43  ;;  %v1951_v49 = vmul.bf16 %v2478_v32, %v1879_v54  ;;  %v2481_v1 = vcombine.low %v2862_v50, %v2862_v50  ;;  %v2482_v13 = vcombine.high %v2862_v50, %v2862_v50  ;;  %v1983_v39 = vld [vmem:[%s3860_s0 + $0x50] sm:$0xff] }
 0x57c   : > { %v2487_v37 = vcombine.low %v1948_v10, %v1949_v14  ;;  %v1952_v6 = vmul.bf16 %v2479_v62, %v1880_v48  ;;  %v1953_v5 = vmul.bf16 %v2480_v4, %v1881_v9  ;;  %v2916_v17 = vmov 0.0   ;;  %v1985_v4 = vld [vmem:[%s3860_s0 + $0x60] sm:$0xff] }
 0x57d   : > { %v2488_v7 = vcombine.low %v1950_v20, %v1951_v49  ;;  %v1954_v34 = vmul.bf16 %v2481_v1, %v1882_v19  ;;  %v1955_v29 = vmul.bf16 %v2482_v13, %v1883_v63  ;;  %2705 = vmatprep.subr.bf16.mxu1 %v2916_v17  ;;  %2721 = vmatprep.mubr.msk.bf16.mxu1 %vm2917_vm7, %v2916_v17  ;;  %v1991_v25 = vmul.f32 0.1, %v1975_v22  ;;  %v1988_v49 = vld [vmem:[%s3860_s0 + $0x78] sm:$0xff] }
 0x57e   : > { %v2489_v16 = vcombine.low %v1952_v6, %v1953_v5  ;;  %v1989_v45 = vmul.f32 0.1, %v1973_v8  ;;  %v1992_v27 = vmul.f32 0.1, %v1976_v24  ;;  %v1990_v56 = vmul.f32 0.1, %v1974_v55 }
 0x57f   : > { %v2490_v23 = vcombine.low %v1954_v34, %v1955_v29  ;;  %v1995_v3 = vmul.f32 0.1, %v1979_v30  ;;  %v1993_v59 = vmul.f32 0.1, %v1977_v51  ;;  %v1996_v60 = vmul.f32 0.1, %v1980_v38 }
 0x580   : > { %v1994_v33 = vmul.f32 0.1, %v1978_v53  ;;  %v1999_v11 = vmul.f32 0.1, %v1983_v39  ;;  %v1997_v10 = vmul.f32 0.1, %v1981_v2 }
 0x581   : > { %v2000_v61 = vmul.f32 0.1, %v1984_v40  ;;  %v1998_v54 = vmul.f32 0.1, %v1982_v35  ;;  %v2001_v6 = vmul.f32 0.1, %v1985_v4 }
 0x582   : > { %2694 = vmatmul.mubr.bf16.gmra.mxu0 %v2486_v36  ;;  %v2004_v13 = vmul.f32 0.1, %v1988_v49  ;;  %v2216_v30 = vld [vmem:[%s3863_s3] sm:$0x1] }
 0x583   : > { %2697 = vmatprep.mubr.bf16.mxu0 %v2487_v37  ;;  %v1987_v37 = vld [vmem:[%s3860_s0 + $0x70] sm:$0xff] }
 0x584   : > { %v2003_v9 = vmul.f32 0.1, %v1987_v37 }
 0x58a   : > { %2698 = vmatmul.mubr.bf16.gmra.mxu0 %v2488_v7  ;;  %v1986_v7 = vld [vmem:[%s3860_s0 + $0x68] sm:$0xff] }
 0x58b   : > { %2701 = vmatprep.mubr.bf16.mxu0 %v2489_v16  ;;  %v2002_v63 = vmul.f32 0.1, %v1986_v7 }
 0x592   : > { %2702 = vmatmul.mubr.bf16.gmra.mxu0 %v2490_v23 }
 0x63a   : > { %v2691_v44 = vpop.f32.mrf.mxu0 }
 0x63b   : > { %v3748_v41 = vadd.f32 %v2691_v44, %v1991_v25 }
 0x63c   : > { %v2135_v42 = vpop.f32.mrf.mxu0 }
 0x63d   : > { %2201 = vst.msk [vmem:[#allocation3 + $0x10] sm:$0xff] %vm1663_vm6, %v3748_v41  ;;  %v3755_v26 = vadd.f32 %v2135_v42, %v1989_v45 }
 0x63e   : > { %v2692_v57 = vpop.f32.mrf.mxu0 }
 0x63f   : > { %2199 = vst.msk [vmem:[#allocation3] sm:$0xff] %vm1663_vm6, %v3755_v26  ;;  %v3762_v46 = vadd.f32 %v2692_v57, %v1992_v27 }
 0x640   : > { %v2138_v58 = vpop.f32.mrf.mxu0 }
 0x641   : > { %2202 = vst.msk [vmem:[#allocation3 + $0x18] sm:$0xff] %vm1663_vm6, %v3762_v46  ;;  %v3769_v31 = vadd.f32 %v2138_v58, %v1990_v56  ;;  %v2218_v27 = vpack.c.bf16 %v3762_v46, %v3748_v41  ;;  %v2215_v56 = vld [vmem:[#allocation6] sm:$0x3] }
 0x642   : > { %v2695_v21 = vpop.f32.mrf.mxu0 }
 0x643   : > { %2200 = vst.msk [vmem:[#allocation3 + $0x8] sm:$0xff] %vm1663_vm6, %v3769_v31  ;;  %v3776_v52 = vadd.f32 %v2695_v21, %v1995_v3  ;;  %v2217_v42 = vpack.c.bf16 %v3769_v31, %v3755_v26 }
 0x644   : > { %v2151_v47 = vpop.f32.mrf.mxu0 }
 0x645   : > { %2205 = vst.msk [vmem:[#allocation3 + $0x30] sm:$0xff] %vm1663_vm6, %v3776_v52  ;;  %v3783_v15 = vadd.f32 %v2151_v47, %v1993_v59 }
 0x646   : > { %v2696_v0 = vpop.f32.mrf.mxu0 }
 0x647   : > { %2203 = vst.msk [vmem:[#allocation3 + $0x20] sm:$0xff] %vm1663_vm6, %v3783_v15  ;;  %v2163_v28 = vadd.f32 %v2696_v0, %v1996_v60 }
 0x648   : > { %v2154_v12 = vpop.f32.mrf.mxu0 }
 0x649   : > { %2206 = vst.msk [vmem:[#allocation3 + $0x38] sm:$0xff] %vm1663_vm6, %v2163_v28  ;;  %v2155_v18 = vadd.f32 %v2154_v12, %v1994_v33  ;;  %v2220_v44 = vpack.c.bf16 %v2163_v28, %v3776_v52 }
 0x64a   : > { %v2699_v14 = vpop.f32.mrf.mxu0 }
 0x64b   : > { %2204 = vst.msk [vmem:[#allocation3 + $0x28] sm:$0xff] %vm1663_vm6, %v2155_v18  ;;  %v2176_v36 = vadd.f32 %v2699_v14, %v1999_v11  ;;  %v2219_v55 = vpack.c.bf16 %v2155_v18, %v3783_v15 }
 0x64c   : > { %v2167_v32 = vpop.f32.mrf.mxu0 }
 0x64d   : > { %2209 = vst.msk [vmem:[#allocation3 + $0x50] sm:$0xff] %vm1663_vm6, %v2176_v36  ;;  %v2168_v43 = vadd.f32 %v2167_v32, %v1997_v10 }
 0x64e   : > { %v2700_v62 = vpop.f32.mrf.mxu0 }
 0x64f   : > { %2207 = vst.msk [vmem:[#allocation3 + $0x40] sm:$0xff] %vm1663_vm6, %v2168_v43  ;;  %v2179_v48 = vadd.f32 %v2700_v62, %v2000_v61 }
 0x650   : > { %v2170_v20 = vpop.f32.mrf.mxu0 }
 0x651   : > { %2210 = vst.msk [vmem:[#allocation3 + $0x58] sm:$0xff] %vm1663_vm6, %v2179_v48  ;;  %v2171_v50 = vadd.f32 %v2170_v20, %v1998_v54  ;;  %v2222_v24 = vpack.c.bf16 %v2179_v48, %v2176_v36 }
 0x652   : > { %v2703_v5 = vpop.f32.mrf.mxu0 }
 0x653   : > { %2208 = vst.msk [vmem:[#allocation3 + $0x48] sm:$0xff] %vm1663_vm6, %v2171_v50  ;;  %v2192_v1 = vadd.f32 %v2703_v5, %v2003_v9  ;;  %v2221_v45 = vpack.c.bf16 %v2171_v50, %v2168_v43 }
 0x654   : > { %v2183_v16 = vpop.f32.mrf.mxu0 }
 0x655   : > { %2213 = vst.msk [vmem:[#allocation3 + $0x70] sm:$0xff] %vm1663_vm6, %v2192_v1  ;;  %v2184_v19 = vadd.f32 %v2183_v16, %v2001_v6 }
 0x656   : > { %v2704_v34 = vpop.f32.mrf.mxu0 }
 0x657   : > { %2211 = vst.msk [vmem:[#allocation3 + $0x60] sm:$0xff] %vm1663_vm6, %v2184_v19  ;;  %v2195_v29 = vadd.f32 %v2704_v34, %v2004_v13 }
 0x658   : > { %v2186_v23 = vpop.f32.mrf.mxu0 }
 0x659   : > { %2214 = vst.msk [vmem:[#allocation3 + $0x78] sm:$0xff] %vm1663_vm6, %v2195_v29  ;;  %v2187_v22 = vadd.f32 %v2186_v23, %v2002_v63  ;;  %v2224_v8 = vpack.c.bf16 %v2195_v29, %v2192_v1 }
 0x65b   : > { %2212 = vst.msk [vmem:[#allocation3 + $0x68] sm:$0xff] %vm1663_vm6, %v2187_v22  ;;  %2706 = vmatpush3.bf16.msra.mxu1 %v2224_v8  ;;  %v2223_v25 = vpack.c.bf16 %v2187_v22, %v2184_v19 }
 0x65c   : > { %2707 = vmatprep.subr.bf16.mxu1 %v2916_v17 }
 0x65f   : > { %2708 = vmatpush3.bf16.msra.mxu1 %v2223_v25 }
 0x660   : > { %2709 = vmatprep.subr.bf16.mxu1 %v2916_v17 }
 0x663   : > { %2710 = vmatpush3.bf16.msra.mxu1 %v2222_v24 }
 0x664   : > { %2711 = vmatprep.subr.bf16.mxu1 %v2916_v17 }
 0x667   : > { %2712 = vmatpush3.bf16.msra.mxu1 %v2221_v45 }
 0x668   : > { %2713 = vmatprep.subr.bf16.mxu1 %v2916_v17 }
 0x66b   : > { %2714 = vmatpush3.bf16.msra.mxu1 %v2220_v44 }
 0x66c   : > { %2715 = vmatprep.subr.bf16.mxu1 %v2916_v17 }
 0x66f   : > { %2716 = vmatpush3.bf16.msra.mxu1 %v2219_v55 }
 0x670   : > { %2717 = vmatprep.subr.bf16.mxu1 %v2916_v17 }
 0x673   : > { %2718 = vmatpush3.bf16.msra.mxu1 %v2218_v27 }
 0x674   : > { %2719 = vmatprep.subr.bf16.mxu1 %v2916_v17 }
 0x677   : > { %2720 = vmatpush3.bf16.msra.mxu1 %v2217_v42 }
 0x67a   : > { %2722 = vmatmul.mubr.bf16.vlgmr.msra.gmra.mxu1 %v2216_v30 }
 0x73a   : > { %v2259_v57 = vpop.f32.mrf.mxu1 }
 0x73b   : > { %v2265_v51 = vadd.f32 %v2259_v57, %v2215_v56 }
 0x73c   : > { %v2723_v3 = vpop.f32.mrf.mxu1 }
 0x73d   : > { %2267 = vst.msk [vmem:[#allocation6] sm:$0x3] %vm2266_vm8, %v2265_v51 }
 0x73e   : > { %v2262_v58 = vpop.f32.mrf.mxu1 }
 0x740   : > { %v2724_v41 = vpop.f32.mrf.mxu1 }
 0x741 PF: > { %p3836_p8 = scmp.eq.s32.totalorder %s2345_s18, 2  ;;  %s2918_s28 = smov [#allocation6]  }
 0x742   : > { %s2275_s29 = sshll.u32 %s2918_s28, 4  ;;  %s2276_s29 = int_to_ptr.vmem [resolvable:$true] %s2275_s29 }
 0x743   : > { %s2863_s30 = scalar_lea.vmem %s2276_s29, 32  ;;  %p2870_p12 = scmp.lt.s32.totalorder %s2276_s29, %s2276_s29 }
 0x744   : > { %p2864_p9 = scmp.ne.s32.totalorder %s2276_s29, %s2863_s30  ;;  %p2871_p13 = scmp.lt.s32.totalorder %s2863_s30, %s2863_s30 }
 0x746   : > { %p2865_p10 = pnand %p2864_p9, %p3836_p8  ;;  %p2872_p0 = por %p2871_p13, %p2870_p12 }
 0x748   : > { %p2866_p11 = pneg %p2865_p10 }
 0x74a   : > { %p2873_p1 = pnand %p2872_p0, %p2866_p11 }
 0x74c   : > { %2876 = shalt.err (!%p2873_p1)
}
 0x74d   : > { %2758 = dma.vmem_to_hbm [thread:$0]  (%p3836_p8), %s2276_s29, 32, %s3864_s4, [#allocation7]  }
 0x74e   : > { %2900 = dma.done.wait (%p3836_p8), [#allocation7], 32  }
 0x74f   : > { %2902 = vsyncadd (%p3836_p8), [#allocation7], 4294967264 }
 0x750 PF: > { %s15_s17 = sadd.s32 1, %s2913_s17   ;;  %s3866_s15 = smov %s2909_s16 }
 0x751   : > { %p12_p2 = scmp.ge.s32.totalorder %s15_s17, 5   ;;  %s3867_s16 = smov %s3869_s19 }
 0x753   :  { %14 = sbr.rel (!%p12_p2) target bundleno = 2 (0x2), region = 104 }
 0x758   :  { %2288 = vsyncpa [#allocation7], 1 }
 0x759   :  { %2290 = vsyncpa [#allocation7 + $0x1], 1 }

</bundles_post_ra>
